<compile_context>
chip_gen: v7x
topology: tpu7x:2x2x1
jax: 0.10.0
libtpu: 0.0.40
codegen_flags: <defaults>
</compile_context>

<pallas_src>
import functools

import jax
import jax.numpy as jnp
from jax.experimental import pallas as pl
from jax.experimental.pallas import tpu as pltpu


def _lenet2_kernel(x_ref, w1_ref, b1_ref, w2_ref, b2_ref, wfc_ref, bfc_ref,
                   out_ref, *, tb, seq_len, ksize, c1):
    """One grid step: TB samples, flat time-major layout (row = t*TB + b)."""
    rows = tb * seq_len

    def ahead(v, d):
        # Row r of the result holds v[r + d] (cyclic).  Wrapped rows only ever
        # land on time positions that are discarded downstream.
        d = d % rows
        if d == 0:
            return v
        return jnp.roll(v, -d, axis=0)

    x = x_ref[...]                                           # (rows, C_in)

    # ---- conv1: a single MXU matmul over all K taps, then shift-and-add ----
    y = jnp.dot(x, w1_ref[...],
                preferred_element_type=jnp.float32)          # (rows, K*c1)
    h = y[:, 0:c1]
    for k in range(1, ksize):
        h = h + ahead(y[:, k * c1:(k + 1) * c1], k * tb)
    h = h + b1_ref[...]                                      # valid for t < l1
    l1 = seq_len - ksize + 1                                 # 24

    # ---- maxpool(2) + ReLU (pooled value j stays at raw row t = 2j) ----
    h = jnp.maximum(jnp.maximum(h, ahead(h, tb)), 0.0)

    # ---- conv2 via im2col: K pooled taps gathered onto lanes, one matmul ----
    patches = jnp.concatenate([ahead(h, 2 * k * tb) for k in range(ksize)],
                              axis=1)                        # (rows, K*c1)
    h2 = jnp.dot(patches, w2_ref[...],
                 preferred_element_type=jnp.float32) + b2_ref[...]
    # TODO(synk): nn.Dropout() treated as identity (eval-mode semantics).

    # ---- maxpool(2) + ReLU on the stride-2 grid (valid at raw t = 4u) ----
    h2 = jnp.maximum(jnp.maximum(h2, ahead(h2, 2 * tb)), 0.0)

    # ---- mean over the n2 valid time steps; result lands in rows [0, tb) ----
    n2 = ((l1 // 2) - ksize + 1) // 2                        # 4
    s = h2
    for u in range(1, n2):
        s = s + ahead(h2, 4 * u * tb)
    m = s[0:tb, :] * (1.0 / n2)                              # (tb, c2)

    # ---- fc (output lanes pre-padded to 128 -> dense, unmasked store) ----
    out_ref[...] = (jnp.dot(m, wfc_ref[...],
                            preferred_element_type=jnp.float32) + bfc_ref[...])


def lenet2_encoder_forward(x_ncl, w1, b1, w2, b2, wfc, bfc, *,
                           batch_tile=64, use_bf16=True):
    """x_ncl: (B, 272, L) float32 in PyTorch NCL layout. Returns (B, 6) f32.

    batch_tile: samples per grid step.  Keep modest (<=128) on v7x (64 MiB
    VMEM); v5e/v6e can go larger (optionally with a raised vmem_limit_bytes).
    """
    B, c_in, L = x_ncl.shape
    K, _, c1 = w1.shape
    c2 = w2.shape[2]
    c_out = wfc.shape[1]

    tb = max(8, (min(batch_tile, max(B, 8)) // 8) * 8)
    g = pl.cdiv(B, tb)
    b_pad = g * tb
    if b_pad != B:
        x_ncl = jnp.pad(x_ncl, ((0, b_pad - B), (0, 0), (0, 0)))

    in_dtype = jnp.bfloat16 if use_bf16 else jnp.float32
    # NCL -> per-block flat time-major (row = t*tb + b, channels on lanes).
    # One fused transpose/cast copy in HBM (bf16 halves its bytes).
    # TODO(synk): could be folded into the input DMA with allow_input_fusion.
    x_prep = x_ncl.astype(in_dtype).reshape(g, tb, c_in, L)
    x_prep = jnp.transpose(x_prep, (0, 3, 1, 2)).reshape(g * L * tb, c_in)

    # Weights: conv taps flattened so each conv is a single matmul; fc weight
    # zero-padded to a lane-dense 128-wide output.
    w1_2d = jnp.transpose(w1, (1, 0, 2)).reshape(c_in, K * c1).astype(in_dtype)
    w2_2d = w2.reshape(K * c1, c2).astype(jnp.float32)
    b1_r = b1.reshape(1, c1).astype(jnp.float32)
    b2_r = b2.reshape(1, c2).astype(jnp.float32)
    n_fc = 128
    wfc_pad = jnp.zeros((c2, n_fc), jnp.float32).at[:, :c_out].set(
        wfc.astype(jnp.float32))
    bfc_pad = jnp.zeros((1, n_fc), jnp.float32).at[:, :c_out].set(
        bfc.reshape(1, c_out).astype(jnp.float32))

    rows = L * tb
    kernel = functools.partial(_lenet2_kernel, tb=tb, seq_len=L, ksize=K,
                               c1=c1)
    out = pl.pallas_call(
        kernel,
        out_shape=jax.ShapeDtypeStruct((b_pad, n_fc), jnp.float32),
        grid=(g,),
        in_specs=[
            pl.BlockSpec((rows, c_in), lambda i: (i, 0)),
            # Weights/biases: constant index maps -> fetched once, VMEM-resident.
            pl.BlockSpec(w1_2d.shape, lambda i: (0, 0)),
            pl.BlockSpec(b1_r.shape, lambda i: (0, 0)),
            pl.BlockSpec(w2_2d.shape, lambda i: (0, 0)),
            pl.BlockSpec(b2_r.shape, lambda i: (0, 0)),
            pl.BlockSpec(wfc_pad.shape, lambda i: (0, 0)),
            pl.BlockSpec(bfc_pad.shape, lambda i: (0, 0)),
        ],
        out_specs=pl.BlockSpec((tb, n_fc), lambda i: (i, 0)),
        compiler_params=pltpu.CompilerParams(
            dimension_semantics=("parallel",)),
    )(x_prep, w1_2d, b1_r, w2_2d, b2_r, wfc_pad, bfc_pad)
    return out[:B, :c_out]


def reference_forward(x_ncl, w1, b1, w2, b2, wfc, bfc):
    """Pure-JAX (f32) reference with the same math, no Pallas."""
    x = jnp.transpose(x_ncl, (0, 2, 1)).astype(jnp.float32)   # (B, L, C)

    def conv1d(h, w, bb):
        K = w.shape[0]
        lo = h.shape[1] - K + 1
        out = sum(jnp.einsum("blc,cd->bld", h[:, k:k + lo, :], w[k])
                  for k in range(K))
        return out + bb.reshape(1, 1, -1)

    def pool_relu(h):
        t = (h.shape[1] // 2) * 2
        p = jnp.maximum(h[:, 0:t:2, :], h[:, 1:t:2, :])
        return jnp.maximum(p, 0.0)

    h = pool_relu(conv1d(x, w1, b1))
    h = pool_relu(conv1d(h, w2, b2))
    m = jnp.mean(h, axis=1)                                   # (B, 50)
    return m @ wfc + bfc.reshape(1, -1)                       # (B, 6)


if __name__ == "__main__":
    B, C_IN, L = 16, 272, 28          # L=28 -> conv/pool chain ends at length 4
    K, C1, C2, C_OUT = 5, 6, 50, 6

    key = jax.random.PRNGKey(0)
    ks = jax.random.split(key, 7)

    def uinit(k, shape, fan_in):
        bound = 1.0 / float(fan_in) ** 0.5
        return jax.random.uniform(k, shape, jnp.float32, -bound, bound)

    # Deterministic synthetic parameters (PyTorch-style fan-in uniform);
    # conv weights stored as (K, C_in, C_out), fc weight as (C_in, C_out).
    w1 = uinit(ks[0], (K, C_IN, C1), C_IN * K)     # Conv1d(272->6, k=5)
    b1 = uinit(ks[1], (C1,), C_IN * K)
    w2 = uinit(ks[2], (K, C1, C2), C1 * K)         # Conv1d(6->50, k=5)
    b2 = uinit(ks[3], (C2,), C1 * K)
    wfc = uinit(ks[4], (C2, C_OUT), C2)            # Linear(50->6)
    bfc = uinit(ks[5], (C_OUT,), C2)

    x = jax.random.normal(ks[6], (B, C_IN, L), jnp.float32)   # PyTorch NCL

    feat = lenet2_encoder_forward(x, w1, b1, w2, b2, wfc, bfc, batch_tile=8)
    feat = jax.block_until_ready(feat)

    ref = reference_forward(x, w1, b1, w2, b2, wfc, bfc)
    assert feat.shape == (B, C_OUT)
    # x / conv1-weight are bf16 in the kernel -> compare against the full-f32
    # reference with a correspondingly relaxed tolerance.
    assert jnp.allclose(feat, ref, atol=1e-2, rtol=1e-2), (
        "mismatch vs reference: max abs diff "
        f"{float(jnp.max(jnp.abs(feat - ref)))}")

    print("KERNEL_OK")
</pallas_src>

<mosaic_0001>
module attributes {stable_mosaic.version = 11 : i64} {
  func.func @_lenet2_kernel(%arg0: i32, %arg1: memref<224x272xbf16, #tpu.memory_space<vmem>>, %arg2: memref<272x30xbf16, #tpu.memory_space<vmem>>, %arg3: memref<1x6xf32, #tpu.memory_space<vmem>>, %arg4: memref<30x50xf32, #tpu.memory_space<vmem>>, %arg5: memref<1x50xf32, #tpu.memory_space<vmem>>, %arg6: memref<50x128xf32, #tpu.memory_space<vmem>>, %arg7: memref<1x128xf32, #tpu.memory_space<vmem>>, %arg8: memref<8x128xf32, #tpu.memory_space<vmem>>) attributes {dimension_semantics = [#tpu.dimension_semantics<parallel>], iteration_bounds = array<i64: 2>, scalar_prefetch = 0 : i64, scratch_operands = 0 : i64, tpu.core_type = #tpu.core_type<tc>, window_params = [{transform_indices = @transform_0, window_bounds = array<i64: 224, 272>}, {pipeline_mode = #tpu.pipeline_mode<synchronous>, transform_indices = @transform_1, window_bounds = array<i64: 272, 30>}, {pipeline_mode = #tpu.pipeline_mode<synchronous>, transform_indices = @transform_2, window_bounds = array<i64: 1, 6>}, {pipeline_mode = #tpu.pipeline_mode<synchronous>, transform_indices = @transform_3, window_bounds = array<i64: 30, 50>}, {pipeline_mode = #tpu.pipeline_mode<synchronous>, transform_indices = @transform_4, window_bounds = array<i64: 1, 50>}, {pipeline_mode = #tpu.pipeline_mode<synchronous>, transform_indices = @transform_5, window_bounds = array<i64: 50, 128>}, {pipeline_mode = #tpu.pipeline_mode<synchronous>, transform_indices = @transform_6, window_bounds = array<i64: 1, 128>}, {transform_indices = @transform_7, window_bounds = array<i64: 8, 128>}]} {
    %c0 = arith.constant 0 : index
    %c0_0 = arith.constant 0 : index
    %0 = vector.load %arg1[%c0, %c0_0] : memref<224x272xbf16, #tpu.memory_space<vmem>>, vector<224x272xbf16>
    %c0_1 = arith.constant 0 : index
    %c0_2 = arith.constant 0 : index
    %1 = vector.load %arg2[%c0_1, %c0_2] : memref<272x30xbf16, #tpu.memory_space<vmem>>, vector<272x30xbf16>
    %cst = arith.constant dense<0.000000e+00> : vector<224x30xf32>
    %2 = tpu.matmul %0, %1, %cst {dimension_numbers = #tpu.dot_dimension_numbers<[1], [0], [0], [1], [0, 0, 1, 1], [], []>} : vector<224x272xbf16>, vector<272x30xbf16>, vector<224x30xf32> -> vector<224x30xf32>
    %3 = vector.extract_strided_slice %2 {offsets = [0, 0], sizes = [224, 6], strides = [1, 1]} : vector<224x30xf32> to vector<224x6xf32>
    %4 = vector.extract_strided_slice %2 {offsets = [0, 6], sizes = [224, 6], strides = [1, 1]} : vector<224x30xf32> to vector<224x6xf32>
    %5 = vector.extract_strided_slice %4 {offsets = [8, 0], sizes = [216, 6], strides = [1, 1]} : vector<224x6xf32> to vector<216x6xf32>
    %6 = vector.extract_strided_slice %4 {offsets = [0, 0], sizes = [8, 6], strides = [1, 1]} : vector<224x6xf32> to vector<8x6xf32>
    %7 = tpu.concatenate %5, %6 in 0 : vector<216x6xf32>, vector<8x6xf32> -> vector<224x6xf32>
    %8 = arith.addf %3, %7 : vector<224x6xf32>
    %9 = vector.extract_strided_slice %2 {offsets = [0, 12], sizes = [224, 6], strides = [1, 1]} : vector<224x30xf32> to vector<224x6xf32>
    %10 = vector.extract_strided_slice %9 {offsets = [16, 0], sizes = [208, 6], strides = [1, 1]} : vector<224x6xf32> to vector<208x6xf32>
    %11 = vector.extract_strided_slice %9 {offsets = [0, 0], sizes = [16, 6], strides = [1, 1]} : vector<224x6xf32> to vector<16x6xf32>
    %12 = tpu.concatenate %10, %11 in 0 : vector<208x6xf32>, vector<16x6xf32> -> vector<224x6xf32>
    %13 = arith.addf %8, %12 : vector<224x6xf32>
    %14 = vector.extract_strided_slice %2 {offsets = [0, 18], sizes = [224, 6], strides = [1, 1]} : vector<224x30xf32> to vector<224x6xf32>
    %15 = vector.extract_strided_slice %14 {offsets = [24, 0], sizes = [200, 6], strides = [1, 1]} : vector<224x6xf32> to vector<200x6xf32>
    %16 = vector.extract_strided_slice %14 {offsets = [0, 0], sizes = [24, 6], strides = [1, 1]} : vector<224x6xf32> to vector<24x6xf32>
    %17 = tpu.concatenate %15, %16 in 0 : vector<200x6xf32>, vector<24x6xf32> -> vector<224x6xf32>
    %18 = arith.addf %13, %17 : vector<224x6xf32>
    %19 = vector.extract_strided_slice %2 {offsets = [0, 24], sizes = [224, 6], strides = [1, 1]} : vector<224x30xf32> to vector<224x6xf32>
    %20 = vector.extract_strided_slice %19 {offsets = [32, 0], sizes = [192, 6], strides = [1, 1]} : vector<224x6xf32> to vector<192x6xf32>
    %21 = vector.extract_strided_slice %19 {offsets = [0, 0], sizes = [32, 6], strides = [1, 1]} : vector<224x6xf32> to vector<32x6xf32>
    %22 = tpu.concatenate %20, %21 in 0 : vector<192x6xf32>, vector<32x6xf32> -> vector<224x6xf32>
    %23 = arith.addf %18, %22 : vector<224x6xf32>
    %c0_3 = arith.constant 0 : index
    %c0_4 = arith.constant 0 : index
    %24 = vector.load %arg3[%c0_3, %c0_4] : memref<1x6xf32, #tpu.memory_space<vmem>>, vector<1x6xf32>
    %25 = vector.broadcast %24 : vector<1x6xf32> to vector<224x6xf32>
    %26 = arith.addf %23, %25 : vector<224x6xf32>
    %27 = vector.extract_strided_slice %26 {offsets = [8, 0], sizes = [216, 6], strides = [1, 1]} : vector<224x6xf32> to vector<216x6xf32>
    %28 = vector.extract_strided_slice %26 {offsets = [0, 0], sizes = [8, 6], strides = [1, 1]} : vector<224x6xf32> to vector<8x6xf32>
    %29 = tpu.concatenate %27, %28 in 0 : vector<216x6xf32>, vector<8x6xf32> -> vector<224x6xf32>
    %30 = arith.maximumf %26, %29 : vector<224x6xf32>
    %cst_5 = arith.constant 0.000000e+00 : f32
    %31 = vector.broadcast %cst_5 : f32 to vector<224x6xf32>
    %32 = arith.maximumf %30, %31 : vector<224x6xf32>
    %33 = vector.extract_strided_slice %32 {offsets = [16, 0], sizes = [208, 6], strides = [1, 1]} : vector<224x6xf32> to vector<208x6xf32>
    %34 = vector.extract_strided_slice %32 {offsets = [0, 0], sizes = [16, 6], strides = [1, 1]} : vector<224x6xf32> to vector<16x6xf32>
    %35 = tpu.concatenate %33, %34 in 0 : vector<208x6xf32>, vector<16x6xf32> -> vector<224x6xf32>
    %36 = vector.extract_strided_slice %32 {offsets = [32, 0], sizes = [192, 6], strides = [1, 1]} : vector<224x6xf32> to vector<192x6xf32>
    %37 = vector.extract_strided_slice %32 {offsets = [0, 0], sizes = [32, 6], strides = [1, 1]} : vector<224x6xf32> to vector<32x6xf32>
    %38 = tpu.concatenate %36, %37 in 0 : vector<192x6xf32>, vector<32x6xf32> -> vector<224x6xf32>
    %39 = vector.extract_strided_slice %32 {offsets = [48, 0], sizes = [176, 6], strides = [1, 1]} : vector<224x6xf32> to vector<176x6xf32>
    %40 = vector.extract_strided_slice %32 {offsets = [0, 0], sizes = [48, 6], strides = [1, 1]} : vector<224x6xf32> to vector<48x6xf32>
    %41 = tpu.concatenate %39, %40 in 0 : vector<176x6xf32>, vector<48x6xf32> -> vector<224x6xf32>
    %42 = vector.extract_strided_slice %32 {offsets = [64, 0], sizes = [160, 6], strides = [1, 1]} : vector<224x6xf32> to vector<160x6xf32>
    %43 = vector.extract_strided_slice %32 {offsets = [0, 0], sizes = [64, 6], strides = [1, 1]} : vector<224x6xf32> to vector<64x6xf32>
    %44 = tpu.concatenate %42, %43 in 0 : vector<160x6xf32>, vector<64x6xf32> -> vector<224x6xf32>
    %45 = tpu.concatenate %32, %35, %38, %41, %44 in 1 : vector<224x6xf32>, vector<224x6xf32>, vector<224x6xf32>, vector<224x6xf32>, vector<224x6xf32> -> vector<224x30xf32>
    %c0_6 = arith.constant 0 : index
    %c0_7 = arith.constant 0 : index
    %46 = vector.load %arg4[%c0_6, %c0_7] : memref<30x50xf32, #tpu.memory_space<vmem>>, vector<30x50xf32>
    %cst_8 = arith.constant dense<0.000000e+00> : vector<224x50xf32>
    %47 = tpu.matmul %45, %46, %cst_8 {dimension_numbers = #tpu.dot_dimension_numbers<[1], [0], [0], [1], [0, 0, 1, 1], [], []>} : vector<224x30xf32>, vector<30x50xf32>, vector<224x50xf32> -> vector<224x50xf32>
    %c0_9 = arith.constant 0 : index
    %c0_10 = arith.constant 0 : index
    %48 = vector.load %arg5[%c0_9, %c0_10] : memref<1x50xf32, #tpu.memory_space<vmem>>, vector<1x50xf32>
    %49 = vector.broadcast %48 : vector<1x50xf32> to vector<224x50xf32>
    %50 = arith.addf %47, %49 : vector<224x50xf32>
    %51 = vector.extract_strided_slice %50 {offsets = [16, 0], sizes = [208, 50], strides = [1, 1]} : vector<224x50xf32> to vector<208x50xf32>
    %52 = vector.extract_strided_slice %50 {offsets = [0, 0], sizes = [16, 50], strides = [1, 1]} : vector<224x50xf32> to vector<16x50xf32>
    %53 = tpu.concatenate %51, %52 in 0 : vector<208x50xf32>, vector<16x50xf32> -> vector<224x50xf32>
    %54 = arith.maximumf %50, %53 : vector<224x50xf32>
    %cst_11 = arith.constant 0.000000e+00 : f32
    %55 = vector.broadcast %cst_11 : f32 to vector<224x50xf32>
    %56 = arith.maximumf %54, %55 : vector<224x50xf32>
    %57 = vector.extract_strided_slice %56 {offsets = [32, 0], sizes = [192, 50], strides = [1, 1]} : vector<224x50xf32> to vector<192x50xf32>
    %58 = vector.extract_strided_slice %56 {offsets = [0, 0], sizes = [32, 50], strides = [1, 1]} : vector<224x50xf32> to vector<32x50xf32>
    %59 = tpu.concatenate %57, %58 in 0 : vector<192x50xf32>, vector<32x50xf32> -> vector<224x50xf32>
    %60 = arith.addf %56, %59 : vector<224x50xf32>
    %61 = vector.extract_strided_slice %56 {offsets = [64, 0], sizes = [160, 50], strides = [1, 1]} : vector<224x50xf32> to vector<160x50xf32>
    %62 = vector.extract_strided_slice %56 {offsets = [0, 0], sizes = [64, 50], strides = [1, 1]} : vector<224x50xf32> to vector<64x50xf32>
    %63 = tpu.concatenate %61, %62 in 0 : vector<160x50xf32>, vector<64x50xf32> -> vector<224x50xf32>
    %64 = arith.addf %60, %63 : vector<224x50xf32>
    %65 = vector.extract_strided_slice %56 {offsets = [96, 0], sizes = [128, 50], strides = [1, 1]} : vector<224x50xf32> to vector<128x50xf32>
    %66 = vector.extract_strided_slice %56 {offsets = [0, 0], sizes = [96, 50], strides = [1, 1]} : vector<224x50xf32> to vector<96x50xf32>
    %67 = tpu.concatenate %65, %66 in 0 : vector<128x50xf32>, vector<96x50xf32> -> vector<224x50xf32>
    %68 = arith.addf %64, %67 : vector<224x50xf32>
    %69 = vector.extract_strided_slice %68 {offsets = [0, 0], sizes = [8, 50], strides = [1, 1]} : vector<224x50xf32> to vector<8x50xf32>
    %cst_12 = arith.constant 2.500000e-01 : f32
    %70 = vector.broadcast %cst_12 : f32 to vector<8x50xf32>
    %71 = arith.mulf %69, %70 : vector<8x50xf32>
    %c0_13 = arith.constant 0 : index
    %c0_14 = arith.constant 0 : index
    %72 = vector.load %arg6[%c0_13, %c0_14] : memref<50x128xf32, #tpu.memory_space<vmem>>, vector<50x128xf32>
    %cst_15 = arith.constant dense<0.000000e+00> : vector<8x128xf32>
    %73 = tpu.matmul %71, %72, %cst_15 {dimension_numbers = #tpu.dot_dimension_numbers<[1], [0], [0], [1], [0, 0, 1, 1], [], []>} : vector<8x50xf32>, vector<50x128xf32>, vector<8x128xf32> -> vector<8x128xf32>
    %c0_16 = arith.constant 0 : index
    %c0_17 = arith.constant 0 : index
    %74 = vector.load %arg7[%c0_16, %c0_17] : memref<1x128xf32, #tpu.memory_space<vmem>>, vector<1x128xf32>
    %75 = vector.broadcast %74 : vector<1x128xf32> to vector<8x128xf32>
    %76 = arith.addf %73, %75 : vector<8x128xf32>
    %c0_18 = arith.constant 0 : index
    %c0_19 = arith.constant 0 : index
    %77 = vector.load %arg8[%c0_18, %c0_19] : memref<8x128xf32, #tpu.memory_space<vmem>>, vector<8x128xf32>
    tpu.vector_store %arg8[%c0_18, %c0_19], %76 {strides = array<i32>} : memref<8x128xf32, #tpu.memory_space<vmem>>, vector<8x128xf32>,
    return
  }
  func.func @transform_0(%arg0: i32) -> (i32, i32) {
    %c0_i32 = arith.constant 0 : i32
    %c0_i32_0 = arith.constant 0 : i32
    return %arg0, %c0_i32 : i32, i32
  }
  func.func @transform_1(%arg0: i32) -> (i32, i32) {
    %c0_i32 = arith.constant 0 : i32
    %c0_i32_0 = arith.constant 0 : i32
    %c0_i32_1 = arith.constant 0 : i32
    return %c0_i32, %c0_i32_0 : i32, i32
  }
  func.func @transform_2(%arg0: i32) -> (i32, i32) {
    %c0_i32 = arith.constant 0 : i32
    %c0_i32_0 = arith.constant 0 : i32
    %c0_i32_1 = arith.constant 0 : i32
    return %c0_i32, %c0_i32_0 : i32, i32
  }
  func.func @transform_3(%arg0: i32) -> (i32, i32) {
    %c0_i32 = arith.constant 0 : i32
    %c0_i32_0 = arith.constant 0 : i32
    %c0_i32_1 = arith.constant 0 : i32
    return %c0_i32, %c0_i32_0 : i32, i32
  }
  func.func @transform_4(%arg0: i32) -> (i32, i32) {
    %c0_i32 = arith.constant 0 : i32
    %c0_i32_0 = arith.constant 0 : i32
    %c0_i32_1 = arith.constant 0 : i32
    return %c0_i32, %c0_i32_0 : i32, i32
  }
  func.func @transform_5(%arg0: i32) -> (i32, i32) {
    %c0_i32 = arith.constant 0 : i32
    %c0_i32_0 = arith.constant 0 : i32
    %c0_i32_1 = arith.constant 0 : i32
    return %c0_i32, %c0_i32_0 : i32, i32
  }
  func.func @transform_6(%arg0: i32) -> (i32, i32) {
    %c0_i32 = arith.constant 0 : i32
    %c0_i32_0 = arith.constant 0 : i32
    %c0_i32_1 = arith.constant 0 : i32
    return %c0_i32, %c0_i32_0 : i32, i32
  }
  func.func @transform_7(%arg0: i32) -> (i32, i32) {
    %c0_i32 = arith.constant 0 : i32
    %c0_i32_0 = arith.constant 0 : i32
    return %arg0, %c0_i32 : i32, i32
  }
}

</mosaic_0001>

<bundles_post_ra>
// kernel: tpu_custom_call.1
= control target key start
LH: loop header
LB: loop body
LE: loop exit
PB: predicated region body
PF: predicated region fallthrough
CT: control target
= control target key end

     0   :  { %12 = vsyncpa [#allocation3], 0  ;;  %s4386_s0 = inlined_call_operand.vmem [shape: bf16[448,272], index: 0, kind: input, shape index: {}]   ;;  %s4387_s1 = inlined_call_operand.vmem [shape: bf16[272,30], index: 1, kind: input, shape index: {}]   ;;  %s4388_s2 = inlined_call_operand.vmem [shape: f32[1,6], index: 2, kind: input, shape index: {}]   ;;  %s4389_s3 = inlined_call_operand.vmem [shape: f32[30,50], index: 3, kind: input, shape index: {}]   ;;  %s4390_s4 = inlined_call_operand.vmem [shape: f32[1,50], index: 4, kind: input, shape index: {}]   ;;  %s4391_s5 = inlined_call_operand.vmem [shape: f32[50,128], index: 5, kind: input, shape index: {}]   ;;  %s4392_s6 = inlined_call_operand.vmem [shape: f32[1,128], index: 6, kind: input, shape index: {}]   ;;  %s4393_s7 = inlined_call_operand.hbm [shape: f32[16,128], index: 7, kind: output, shape index: {}]  }
   0x1   :  { %14 = vsyncpa [#allocation3 + $0x1], 0  ;;  %s3159_s24 = smov 0   ;;  %s3161_s25 = smov 0  }
   0x2   :  { %s3163_s26 = smov 0   ;;  %s3165_s27 = smov 0  }
   0x3 LB: > { %s3180_s28 = sadd.s32 4294967295, %s3104_s27   ;;  %s2528_s29 = sadd.s32 4294967294, %s3104_s27   ;;  %s3104_s27 = sphi %s3165_s27, %s4422_s27   ;;  %s3100_s26 = sphi %s3163_s26, %s4421_s26   ;;  %s3096_s25 = sphi %s3161_s25, %s4420_s25   ;;  %s3092_s24 = sphi %s3159_s24, %s4419_s24  }
   0x4   : > { %s3184_s30 = sadd.s32 1, %s3104_s27   ;;  %s179_s8 = sadd.s32 1, %s3100_s26 }
   0x5   : > { %s176_s9 = ssub.s32 %s3104_s27, %s3184_s30  ;;  %p189_p0 = scmp.ne.s32.totalorder %s3100_s26, %s3096_s25 }
   0x6   : > { %p177_p1 = scmp.eq.s32.totalorder %s176_s9, 0  ;;  %p190_p2 = scmp.eq.s32.totalorder %s3180_s28, 1 }
   0x7   : > { %p195_p3 = scmp.ne.s32.totalorder %s3096_s25, %s3092_s24  ;;  %p196_p4 = scmp.eq.s32.totalorder %s2528_s29, 1 }
   0x8   : > { %s3195_s10 = scalar_select %p177_p1, %s3100_s26, %s179_s8  }
   0x9   : > { %p3197_p5 = por %p190_p2, %p189_p0  ;;  %p3201_p6 = por %p196_p4, %p195_p3 }
   0xa   : > { %p2531_p7 = scmp.ge.s32.totalorder %s3104_s27, 1  ;;  %p242_p8 = scmp.lt.s32.totalorder %s3104_s27, 3 }
   0xc   : > { %p243_p9 = pnand %p2531_p7, %p242_p8 }
   0xe   : > { %246 = sbr.rel (%p243_p9) target bundleno = 1173 (0x495), region = 48 }
  0x15   : > { %v2968_v0 = vld [vmem:[%s4387_s1 + $0x40] sm:$0xff]   ;;  %s275_s15 = smul.u32 28, %s3180_s28  ;;  %v2970_v2 = vld [vmem:[%s4387_s1 + $0x48] sm:$0xff]   ;;  %v2972_v4 = vld [vmem:[%s4387_s1 + $0x50] sm:$0xff]   ;;  %vm685_vm0 = vcmask 130048   ;;  %s3106_s8 = smov 104  }
  0x16   : > { %v2969_v1 = vld [vmem:[%s4387_s1] sm:$0xff]   ;;  %2645 = vmatprep.subr.bf16.mxu0 %v2968_v0  ;;  %v2971_v3 = vld [vmem:[%s4387_s1 + $0x8] sm:$0xff]   ;;  %v2973_v5 = vld [vmem:[%s4387_s1 + $0x10] sm:$0xff]   ;;  %s3109_s13 = smov 110   ;;  %s3110_s18 = smov 6   ;;  %vm2161_vm1 = vcmask 1045504  }
  0x17   : > { %2646 = vmatpush3.bf16.msra.mxu0 %v2969_v1  ;;  %p276_p10 = scmp.lt.s32.totalorder %s275_s15, 55  ;;  %v2974_v6 = vld [vmem:[%s4387_s1 + $0x58] sm:$0xff]   ;;  %v2976_v8 = vld [vmem:[%s4387_s1 + $0x60] sm:$0xff]   ;;  %v2978_v10 = vld [vmem:[%s4387_s1 + $0x68] sm:$0xff]   ;;  %s3111_s19 = smov 12   ;;  %vm3113_vm2 = vmmov 1  }
  0x18   : > { %2647 = vmatprep.subr.bf16.mxu0 %v2970_v2  ;;  %v2975_v7 = vld [vmem:[%s4387_s1 + $0x18] sm:$0xff]   ;;  %v2977_v9 = vld [vmem:[%s4387_s1 + $0x20] sm:$0xff]   ;;  %v2979_v12 = vld [vmem:[%s4387_s1 + $0x28] sm:$0xff]   ;;  %s3112_s23 = smov 18   ;;  %s3114_s20 = smov 24   ;;  %vm1949_vm4 = vcmask 48128  }
  0x19   : > { %s4424_s15 = smov (!%p276_p10, %s275_s15), 55  ;;  %v2984_v11 = vld [vmem:[%s4387_s1 + $0x80] sm:$0xff]   ;;  %v2980_v13 = vld [vmem:[%s4387_s1 + $0x70] sm:$0xff]   ;;  %v2982_v19 = vld [vmem:[%s4387_s1 + $0x78] sm:$0xff]   ;;  %vm1978_vm5 = vcmask 97280   ;;  %vm2007_vm6 = vcmask 146432  }
  0x1a   : > { %s2916_s17 = smul.u32 12, %s4424_s15  ;;  %2800 = vmatprep.subr.bf16.mxu1 %v2984_v11  ;;  %v2981_v17 = vld [vmem:[%s4387_s1 + $0x30] sm:$0xff]   ;;  %v2983_v21 = vld [vmem:[%s4387_s1 + $0x38] sm:$0xff]   ;;  %s3108_s15 = smov 116   ;;  %vm2902_vm3 = vmpackc.low %vm2161_vm1, %vm3113_vm2  ;;  %vm2036_vm7 = vcmask 195584   ;;  %vm2076_vm8 = vcmask 244736  }
  0x1b   : > { %2648 = vmatpush3.bf16.msra.mxu0 %v2971_v3  ;;  %2801 = vmatpush3.bf16.msra.mxu1 %v2984_v11  ;;  %vm2380_vm9 = vcmask 1041408   ;;  %vm3117_vm10 = vmmov 0   ;;  %vm2376_vm11 = vcmask 408576   ;;  %s2642_s16 = sshll.u32 %s3180_s28, 7  ;;  %s3118_s28 = smov [#allocation2]  }
  0x1c   : > { %2649 = vmatprep.subr.bf16.mxu0 %v2972_v4  ;;  %s3244_s9 = scalar_lea.vmem %s4386_s0, %s2916_s17 }
  0x1d   : > { %v2987_v14 = vld [vmem:[%s3244_s9 + $0x4] ss:$12 sps:$4 sm:$0xff]   ;;  %v2988_v15 = vld [vmem:[%s3244_s9 + $0x8] ss:$12 sps:$4 sm:$0xff]   ;;  %v2989_v16 = vld [vmem:[%s3244_s9 + $0x20] ss:$12 sps:$4 sm:$0xff]  }
  0x1e   : > { %760 = vmatprep.mubr.bf16.mxu0 %v2987_v14  ;;  %2802 = vmatprep.mubr.msk.bf16.mxu1 %vm685_vm0, %v2988_v15  ;;  %v2995_v18 = vld [vmem:[%s3244_s9 + $0x38] ss:$12 sps:$4 sm:$0xff]   ;;  %v2997_v20 = vld [vmem:[%s3244_s9 + $0x50] ss:$12 sps:$4 sm:$0xff]   ;;  %v3007_v22 = vld [vmem:[%s3244_s9 + $0x68] ss:$12 sps:$4 sm:$0xff]  }
  0x1f   : > { %2650 = vmatpush3.bf16.msra.mxu0 %v2973_v5  ;;  %2803 = vmatmul.mubr.msk.bf16.vlgmr.msra.gmra.mrb[0].mxu1 %vm685_vm0, %v2989_v16  ;;  %v2985_v23 = vld [vmem:[%s3244_s9] ss:$12 sps:$4 sm:$0xff]   ;;  %v2990_v24 = vld [vmem:[%s3244_s9 + $0x1c] ss:$12 sps:$4 sm:$0xff]   ;;  %v3015_v26 = vld [vmem:[%s3244_s9 + $0x98] ss:$12 sps:$4 sm:$0xff]  }
  0x20   : > { %2651 = vmatprep.subr.bf16.mxu0 %v2974_v6  ;;  %2806 = vmatprep.mubr.msk.bf16.mxu1 %vm685_vm0, %v2995_v18  ;;  %v3008_v25 = vld [vmem:[%s3244_s9 + $0x80] ss:$12 sps:$4 sm:$0xff]   ;;  %v2992_v27 = vld [vmem:[%s3244_s9 + $0x18] ss:$12 sps:$4 sm:$0xff]   ;;  %v3016_v29 = vld [vmem:[%s3244_s9 + $0xb0] ss:$12 sps:$4 sm:$0xff]  }
  0x21   : > { %v2993_v28 = vld [vmem:[%s3244_s9 + $0x34] ss:$12 sps:$4 sm:$0xff]   ;;  %v2996_v31 = vld [vmem:[%s3244_s9 + $0x30] ss:$12 sps:$4 sm:$0xff]   ;;  %v2998_v32 = vld [vmem:[%s3244_s9 + $0x4c] ss:$12 sps:$4 sm:$0xff]  }
  0x22   : > { %v3023_v30 = vld [vmem:[%s3244_s9 + $0xc8] ss:$12 sps:$4 sm:$0xff]   ;;  %v3024_v33 = vld [vmem:[%s3244_s9 + $0xe0] ss:$12 sps:$4 sm:$0xff]   ;;  %v3031_v34 = vld [vmem:[%s3244_s9 + $0xf8] ss:$12 sps:$4 sm:$0xff]  }
  0x23   : > { %2652 = vmatpush3.bf16.msra.mxu0 %v2975_v7  ;;  %v3000_v35 = vld [vmem:[%s3244_s9 + $0x48] ss:$12 sps:$4 sm:$0xff]   ;;  %v3001_v36 = vld [vmem:[%s3244_s9 + $0x64] ss:$12 sps:$4 sm:$0xff]   ;;  %v3003_v39 = vld [vmem:[%s3244_s9 + $0x60] ss:$12 sps:$4 sm:$0xff]  }
  0x24   : > { %2653 = vmatprep.subr.bf16.mxu0 %v2976_v8  ;;  %v3032_v37 = vld [vmem:[%s3244_s9 + $0x110] ss:$12 sps:$4 sm:$0xff]   ;;  %v3039_v38 = vld [vmem:[%s3244_s9 + $0x128] ss:$12 sps:$4 sm:$0xff]   ;;  %v3040_v41 = vld [vmem:[%s3244_s9 + $0x140] ss:$12 sps:$4 sm:$0xff]  }
  0x25   : > { %v3004_v40 = vld [vmem:[%s3244_s9 + $0x7c] ss:$12 sps:$4 sm:$0xff]   ;;  %v3006_v42 = vld [vmem:[%s3244_s9 + $0x78] ss:$12 sps:$4 sm:$0xff]   ;;  %v3009_v43 = vld [vmem:[%s3244_s9 + $0x94] ss:$12 sps:$4 sm:$0xff]  }
  0x26   : > { %v3011_v44 = vld [vmem:[%s3244_s9 + $0x90] ss:$12 sps:$4 sm:$0xff]   ;;  %v3012_v45 = vld [vmem:[%s3244_s9 + $0xac] ss:$12 sps:$4 sm:$0xff]   ;;  %v3014_v46 = vld [vmem:[%s3244_s9 + $0xa8] ss:$12 sps:$4 sm:$0xff]  }
  0x27   : > { %2654 = vmatpush3.bf16.msra.mxu0 %v2977_v9  ;;  %2807 = vmatmul.mubr.msk.bf16.gmra.mrb[4].mxu1 %vm685_vm0, %v2997_v20  ;;  %v3017_v47 = vld [vmem:[%s3244_s9 + $0xc4] ss:$12 sps:$4 sm:$0xff]   ;;  %v3019_v48 = vld [vmem:[%s3244_s9 + $0xc0] ss:$12 sps:$4 sm:$0xff]   ;;  %v3020_v49 = vld [vmem:[%s3244_s9 + $0xdc] ss:$12 sps:$4 sm:$0xff]  }
  0x28   : > { %2655 = vmatprep.subr.bf16.mxu0 %v2978_v10  ;;  %2810 = vmatprep.mubr.msk.bf16.mxu1 %vm685_vm0, %v3007_v22  ;;  %v3022_v50 = vld [vmem:[%s3244_s9 + $0xd8] ss:$12 sps:$4 sm:$0xff]   ;;  %v3025_v51 = vld [vmem:[%s3244_s9 + $0xf4] ss:$12 sps:$4 sm:$0xff]   ;;  %v3027_v52 = vld [vmem:[%s3244_s9 + $0xf0] ss:$12 sps:$4 sm:$0xff]  }
  0x29   : > { %v3028_v53 = vld [vmem:[%s3244_s9 + $0x10c] ss:$12 sps:$4 sm:$0xff]   ;;  %v3030_v54 = vld [vmem:[%s3244_s9 + $0x108] ss:$12 sps:$4 sm:$0xff]   ;;  %v3033_v55 = vld [vmem:[%s3244_s9 + $0x124] ss:$12 sps:$4 sm:$0xff]  }
  0x2a   : > { %v3035_v56 = vld [vmem:[%s3244_s9 + $0x120] ss:$12 sps:$4 sm:$0xff]   ;;  %v3036_v57 = vld [vmem:[%s3244_s9 + $0x13c] ss:$12 sps:$4 sm:$0xff]   ;;  %v3038_v58 = vld [vmem:[%s3244_s9 + $0x138] ss:$12 sps:$4 sm:$0xff]  }
  0x2b   : > { %2656 = vmatpush3.bf16.msra.mxu0 %v2979_v12  ;;  %s3107_s9 = smov 122  }
  0x2c   : > { %2657 = vmatprep.subr.bf16.mxu0 %v2980_v13 }
  0x2f   : > { %2658 = vmatpush3.bf16.msra.mxu0 %v2981_v17  ;;  %2811 = vmatmul.mubr.msk.bf16.gmra.mrb[8].mxu1 %vm685_vm0, %v3008_v25 }
  0x30   : > { %2659 = vmatprep.subr.bf16.mxu0 %v2982_v19  ;;  %2814 = vmatprep.mubr.msk.bf16.mxu1 %vm685_vm0, %v3015_v26 }
  0x33   : > { %2660 = vmatpush3.bf16.msra.mxu0 %v2983_v21 }
  0x36   : > { %761 = vmatmul.mubr.bf16.vlgmr.msra.gmra.mrb[0].mxu0 %v2985_v23 }
  0x37   : > { %768 = vmatprep.mubr.bf16.mxu0 %v2990_v24  ;;  %2815 = vmatmul.mubr.msk.bf16.gmra.mrb[12].mxu1 %vm685_vm0, %v3016_v29 }
  0x38   : > { %2818 = vmatprep.mubr.msk.bf16.mxu1 %vm685_vm0, %v3023_v30 }
  0x3e   : > { %769 = vmatmul.mubr.bf16.gmra.mrb[4].mxu0 %v2992_v27 }
  0x3f   : > { %776 = vmatprep.mubr.bf16.mxu0 %v2993_v28  ;;  %2819 = vmatmul.mubr.msk.bf16.gmra.mrb[16].mxu1 %vm685_vm0, %v3024_v33 }
  0x40   : > { %2822 = vmatprep.mubr.msk.bf16.mxu1 %vm685_vm0, %v3031_v34 }
  0x46   : > { %777 = vmatmul.mubr.bf16.gmra.mrb[8].mxu0 %v2996_v31 }
  0x47   : > { %784 = vmatprep.mubr.bf16.mxu0 %v2998_v32  ;;  %2823 = vmatmul.mubr.msk.bf16.gmra.mrb[20].mxu1 %vm685_vm0, %v3032_v37 }
  0x48   : > { %2826 = vmatprep.mubr.msk.bf16.mxu1 %vm685_vm0, %v3039_v38 }
  0x4e   : > { %785 = vmatmul.mubr.bf16.gmra.mrb[12].mxu0 %v3000_v35 }
  0x4f   : > { %792 = vmatprep.mubr.bf16.mxu0 %v3001_v36  ;;  %2827 = vmatmul.mubr.msk.bf16.gmra.mrb[24].mxu1 %vm685_vm0, %v3040_v41 }
  0x56   : > { %793 = vmatmul.mubr.bf16.gmra.mrb[16].mxu0 %v3003_v39 }
  0x57   : > { %800 = vmatprep.mubr.bf16.mxu0 %v3004_v40 }
  0x5e   : > { %801 = vmatmul.mubr.bf16.gmra.mrb[20].mxu0 %v3006_v42 }
  0x5f   : > { %808 = vmatprep.mubr.bf16.mxu0 %v3009_v43 }
  0x66   : > { %809 = vmatmul.mubr.bf16.gmra.mrb[24].mxu0 %v3011_v44 }
  0x67   : > { %816 = vmatprep.mubr.bf16.mxu0 %v3012_v45 }
  0x6e   : > { %817 = vmatmul.mubr.bf16.gmra.mrb[28].mxu0 %v3014_v46 }
  0x6f   : > { %824 = vmatprep.mubr.bf16.mxu0 %v3017_v47 }
  0x76   : > { %825 = vmatmul.mubr.bf16.gmra.mrb[32].mxu0 %v3019_v48 }
  0x77   : > { %832 = vmatprep.mubr.bf16.mxu0 %v3020_v49 }
  0x7e   : > { %833 = vmatmul.mubr.bf16.gmra.mrb[36].mxu0 %v3022_v50 }
  0x7f   : > { %840 = vmatprep.mubr.bf16.mxu0 %v3025_v51 }
  0x86   : > { %841 = vmatmul.mubr.bf16.gmra.mrb[40].mxu0 %v3027_v52 }
  0x87   : > { %848 = vmatprep.mubr.bf16.mxu0 %v3028_v53 }
  0x8e   : > { %849 = vmatmul.mubr.bf16.gmra.mrb[44].mxu0 %v3030_v54 }
  0x8f   : > { %856 = vmatprep.mubr.bf16.mxu0 %v3033_v55 }
  0x96   : > { %857 = vmatmul.mubr.bf16.gmra.mrb[48].mxu0 %v3035_v56 }
  0x97   : > { %864 = vmatprep.mubr.bf16.mxu0 %v3036_v57 }
  0x9e   : > { %865 = vmatmul.mubr.bf16.gmra.mrb[52].mxu0 %v3038_v58 }
  0xf2   : > { %v2804_v59 = vpop.f32.mrb[0].mxu1 }
  0xf3   : > { %v907_v60 = vpop.f32.mrb[1].mxu1 }
  0xf4   : > { %v2805_v61 = vpop.f32.mrb[2].mxu1 }
  0xf5   : > { %v910_v62 = vpop.f32.mrb[3].mxu1 }
  0xfa   : > { %v2808_v63 = vpop.f32.mrb[4].mxu1 }
  0xfb   : > { %v923_v0 = vpop.f32.mrb[5].mxu1 }
  0xfc   : > { %v2809_v1 = vpop.f32.mrb[6].mxu1 }
  0xfd   : > { %v926_v2 = vpop.f32.mrb[7].mxu1 }
 0x102   : > { %v3322_v10 = vpop.f32.mrb[8].mxu1 }
 0x103   : > { %v3324_v11 = vpop.f32.mrb[9].mxu1 }
 0x104   : > { %v3330_v13 = vpop.f32.mrb[10].mxu1 }
 0x105   : > { %v942_v14 = vpop.f32.mrb[11].mxu1 }
 0x109   : > { %v2661_v3 = vpop.f32.mrb[0].mxu0 }
 0x10a   : > { %v2662_v4 = vpop.f32.mrb[1].mxu0  ;;  %v3336_v22 = vpop.f32.mrb[12].mxu1 }
 0x10b   : > { %v2663_v5 = vadd.f32 %v2662_v4, %v2661_v3  ;;  %v2664_v6 = vpop.f32.mrb[2].mxu0  ;;  %v3338_v23 = vpop.f32.mrb[13].mxu1 }
 0x10c   : > { %v2665_v7 = vpop.f32.mrb[3].mxu0  ;;  %v3346_v25 = vpop.f32.mrb[14].mxu1 }
 0x10d   : > { %v3320_v8 = vadd.f32 %v2663_v5, %v907_v60  ;;  %v2666_v9 = vadd.f32 %v2665_v7, %v2664_v6  ;;  %v3348_v26 = vpop.f32.mrb[15].mxu1 }
 0x10f   : > { %4399 = vst [vmem:[#allocation5_spill] sm:$0xff] %v3320_v8  ;;  %v3326_v12 = vadd.f32 %v2666_v9, %v910_v62  ;;  %1430 = vrot.lane.b32.xlu1 %v3320_v8, %s3106_s8 }
 0x111   : > { %v2667_v15 = vpop.f32.mrb[4].mxu0  ;;  %1046 = vrot.lane.b32.xlu0 %v3326_v12, %s3107_s9 }
 0x112   : > { %v2668_v16 = vpop.f32.mrb[5].mxu0  ;;  %v3356_v34 = vpop.f32.mrb[16].mxu1 }
 0x113   : > { %v2669_v17 = vadd.f32 %v2668_v16, %v2667_v15  ;;  %v2670_v18 = vpop.f32.mrb[6].mxu0  ;;  %v3358_v35 = vpop.f32.mrb[17].mxu1 }
 0x114   : > { %v2671_v19 = vpop.f32.mrb[7].mxu0  ;;  %v3366_v37 = vpop.f32.mrb[18].mxu1 }
 0x115   : > { %v3334_v20 = vadd.f32 %v2804_v59, %v2669_v17  ;;  %v2672_v21 = vadd.f32 %v2671_v19, %v2670_v18  ;;  %v3368_v38 = vpop.f32.mrb[19].mxu1 }
 0x117   : > { %v3340_v24 = vadd.f32 %v2805_v61, %v2672_v21  ;;  %1158 = vrot.lane.b32.xlu0 %v3334_v20, %s3108_s15  ;;  %1048 = vrot.lane.b32.xlu1 %v3334_v20, %s3107_s9 }
 0x119   : > { %4400 = vst [vmem:[#allocation6_spill] sm:$0xff] %v3340_v24  ;;  %v2673_v27 = vpop.f32.mrb[8].mxu0 }
 0x11a   : > { %v2674_v28 = vpop.f32.mrb[9].mxu0  ;;  %v3376_v46 = vpop.f32.mrb[20].mxu1 }
 0x11b   : > { %v2675_v29 = vadd.f32 %v2674_v28, %v2673_v27  ;;  %v2676_v30 = vpop.f32.mrb[10].mxu0  ;;  %1050 = vrot.lane.b32.xlu0 %v3340_v24, %s3107_s9  ;;  %1160 = vrot.lane.b32.xlu1 %v3340_v24, %s3108_s15  ;;  %v3378_v47 = vpop.f32.mrb[21].mxu1 }
 0x11c   : > { %v2677_v31 = vpop.f32.mrb[11].mxu0  ;;  %v3386_v49 = vpop.f32.mrb[22].mxu1 }
 0x11d   : > { %v3354_v32 = vadd.f32 %v2675_v29, %v923_v0  ;;  %v2678_v33 = vadd.f32 %v2677_v31, %v2676_v30  ;;  %v3388_v50 = vpop.f32.mrb[23].mxu1 }
 0x11f   : > { %v3360_v36 = vadd.f32 %v2678_v33, %v926_v2  ;;  %1270 = vrot.lane.b32.xlu0 %v3340_v24, %s3109_s13  ;;  %1272 = vrot.lane.b32.xlu1 %v3354_v32, %s3109_s13 }
 0x121   : > { %v2679_v39 = vpop.f32.mrb[12].mxu0 }
 0x122   : > { %v2680_v40 = vpop.f32.mrb[13].mxu0  ;;  %v3417_v3 = vpop.f32.mrb[24].mxu1 }
 0x123   : > { %v2681_v41 = vadd.f32 %v2680_v40, %v2679_v39  ;;  %v2682_v42 = vpop.f32.mrb[14].mxu0  ;;  %1052 = vrot.lane.b32.xlu0 %v3354_v32, %s3107_s9  ;;  %1054 = vrot.lane.b32.xlu1 %v3360_v36, %s3107_s9  ;;  %v3419_v5 = vpop.f32.mrb[25].mxu1 }
 0x124   : > { %v2683_v43 = vpop.f32.mrb[15].mxu0  ;;  %v3421_v7 = vpop.f32.mrb[26].mxu1 }
 0x125   : > { %v3374_v44 = vadd.f32 %v2808_v63, %v2681_v41  ;;  %v2684_v45 = vadd.f32 %v2683_v43, %v2682_v42 }
 0x127   : > { %v3380_v48 = vadd.f32 %v2809_v1, %v2684_v45  ;;  %1162 = vrot.lane.b32.xlu0 %v3354_v32, %s3108_s15  ;;  %1164 = vrot.lane.b32.xlu1 %v3360_v36, %s3108_s15 }
 0x129   : > { %v2685_v51 = vpop.f32.mrb[16].mxu0 }
 0x12a   : > { %v2686_v52 = vpop.f32.mrb[17].mxu0 }
 0x12b   : > { %1382 = vrot.lane.b32.xlu0 %v3354_v32, %s3106_s8  ;;  %1274 = vrot.lane.b32.xlu1 %v3360_v36, %s3109_s13  ;;  %v2687_v53 = vadd.f32 %v2686_v52, %v2685_v51  ;;  %v2688_v54 = vpop.f32.mrb[18].mxu0 }
 0x12c   : > { %v2689_v55 = vpop.f32.mrb[19].mxu0 }
 0x12d   : > { %v2690_v56 = vadd.f32 %v2689_v55, %v2688_v54  ;;  %v3395_v57 = vadd.f32 %v2687_v53, %v3324_v11  ;;  %v3427_v11 = vpop.f32.mrb[27].mxu1 }
 0x12f   : > { %1166 = vrot.lane.b32.xlu0 %v3374_v44, %s3108_s15  ;;  %1384 = vrot.lane.b32.xlu1 %v3360_v36, %s3106_s8  ;;  %v3401_v58 = vadd.f32 %v2690_v56, %v942_v14 }
 0x131   : > { %v2691_v59 = vpop.f32.mrb[20].mxu0 }
 0x132   : > { %v2692_v60 = vpop.f32.mrb[21].mxu0 }
 0x133   : > { %1276 = vrot.lane.b32.xlu0 %v3374_v44, %s3109_s13  ;;  %1056 = vrot.lane.b32.xlu1 %v3374_v44, %s3107_s9  ;;  %v2693_v61 = vadd.f32 %v2692_v60, %v2691_v59  ;;  %v2694_v62 = vpop.f32.mrb[22].mxu0 }
 0x134   : > { %v2695_v63 = vpop.f32.mrb[23].mxu0 }
 0x135   : > { %v3408_v0 = vadd.f32 %v3322_v10, %v2693_v61  ;;  %v2696_v1 = vadd.f32 %v2695_v63, %v2694_v62 }
 0x137   : > { %1386 = vrot.lane.b32.xlu0 %v3374_v44, %s3106_s8  ;;  %1168 = vrot.lane.b32.xlu1 %v3380_v48, %s3108_s15  ;;  %v3415_v2 = vadd.f32 %v3330_v13, %v2696_v1 }
 0x139   : > { %v2697_v4 = vpop.f32.mrb[24].mxu0 }
 0x13a   : > { %v2698_v6 = vpop.f32.mrb[25].mxu0 }
 0x13b   : > { %1058 = vrot.lane.b32.xlu0 %v3380_v48, %s3107_s9  ;;  %1278 = vrot.lane.b32.xlu1 %v3380_v48, %s3109_s13  ;;  %v2699_v9 = vadd.f32 %v2698_v6, %v2697_v4  ;;  %v2700_v10 = vpop.f32.mrb[26].mxu0 }
 0x13c   : > { %v2701_v13 = vpop.f32.mrb[27].mxu0 }
 0x13d   : > { %v2702_v14 = vadd.f32 %v2701_v13, %v2700_v10  ;;  %v3430_v15 = vadd.f32 %v2699_v9, %v3338_v23 }
 0x13f   : > { %1280 = vrot.lane.b32.xlu0 %v3395_v57, %s3109_s13  ;;  %1388 = vrot.lane.b32.xlu1 %v3380_v48, %s3106_s8  ;;  %v3437_v16 = vadd.f32 %v2702_v14, %v3348_v26 }
 0x141   : > { %v2703_v17 = vpop.f32.mrb[28].mxu0 }
 0x142   : > { %v2704_v18 = vpop.f32.mrb[29].mxu0 }
 0x143   : > { %1062 = vrot.lane.b32.xlu0 %v3401_v58, %s3107_s9  ;;  %1060 = vrot.lane.b32.xlu1 %v3395_v57, %s3107_s9  ;;  %v2705_v19 = vadd.f32 %v2704_v18, %v2703_v17  ;;  %v2706_v21 = vpop.f32.mrb[30].mxu0 }
 0x144   : > { %v2707_v23 = vpop.f32.mrb[31].mxu0 }
 0x145   : > { %v3444_v27 = vadd.f32 %v3336_v22, %v2705_v19  ;;  %v2708_v28 = vadd.f32 %v2707_v23, %v2706_v21 }
 0x147   : > { %1172 = vrot.lane.b32.xlu0 %v3401_v58, %s3108_s15  ;;  %1170 = vrot.lane.b32.xlu1 %v3395_v57, %s3108_s15  ;;  %v3451_v26 = vadd.f32 %v3346_v25, %v2708_v28 }
 0x149   : > { %v2709_v29 = vpop.f32.mrb[32].mxu0 }
 0x14a   : > { %v2710_v30 = vpop.f32.mrb[33].mxu0 }
 0x14b   : > { %1282 = vrot.lane.b32.xlu0 %v3401_v58, %s3109_s13  ;;  %1390 = vrot.lane.b32.xlu1 %v3395_v57, %s3106_s8  ;;  %v2711_v22 = vadd.f32 %v2710_v30, %v2709_v29  ;;  %v2712_v31 = vpop.f32.mrb[34].mxu0 }
 0x14c   : > { %v2713_v33 = vpop.f32.mrb[35].mxu0 }
 0x14d   : > { %v2714_v39 = vadd.f32 %v2713_v33, %v2712_v31  ;;  %v3458_v40 = vadd.f32 %v2711_v22, %v3358_v35 }
 0x14f   : > { %1392 = vrot.lane.b32.xlu0 %v3401_v58, %s3106_s8  ;;  %1064 = vrot.lane.b32.xlu1 %v3408_v0, %s3107_s9  ;;  %v3465_v25 = vadd.f32 %v2714_v39, %v3368_v38 }
 0x151   : > { %v2715_v41 = vpop.f32.mrb[36].mxu0 }
 0x152   : > { %v2716_v42 = vpop.f32.mrb[37].mxu0 }
 0x153   : > { %1066 = vrot.lane.b32.xlu0 %v3415_v2, %s3107_s9  ;;  %1174 = vrot.lane.b32.xlu1 %v3408_v0, %s3108_s15  ;;  %v2717_v43 = vadd.f32 %v2716_v42, %v2715_v41  ;;  %v2718_v35 = vpop.f32.mrb[38].mxu0 }
 0x154   : > { %v2719_v45 = vpop.f32.mrb[39].mxu0 }
 0x155   : > { %v3472_v51 = vadd.f32 %v3356_v34, %v2717_v43  ;;  %v2720_v52 = vadd.f32 %v2719_v45, %v2718_v35 }
 0x157   : > { %1176 = vrot.lane.b32.xlu0 %v3415_v2, %s3108_s15  ;;  %1284 = vrot.lane.b32.xlu1 %v3408_v0, %s3109_s13  ;;  %v3479_v38 = vadd.f32 %v3366_v37, %v2720_v52 }
 0x159   : > { %v2721_v53 = vpop.f32.mrb[40].mxu0 }
 0x15a   : > { %v2722_v54 = vpop.f32.mrb[41].mxu0 }
 0x15b   : > { %1396 = vrot.lane.b32.xlu0 %v3415_v2, %s3106_s8  ;;  %1394 = vrot.lane.b32.xlu1 %v3408_v0, %s3106_s8  ;;  %v2723_v34 = vadd.f32 %v2722_v54, %v2721_v53  ;;  %v2724_v55 = vpop.f32.mrb[42].mxu0 }
 0x15c   : > { %v2725_v56 = vpop.f32.mrb[43].mxu0 }
 0x15d   : > { %v2726_v59 = vadd.f32 %v2725_v56, %v2724_v55  ;;  %v3486_v60 = vadd.f32 %v2723_v34, %v3378_v47 }
 0x15f   : > { %1068 = vrot.lane.b32.xlu0 %v3430_v15, %s3107_s9  ;;  %1286 = vrot.lane.b32.xlu1 %v3415_v2, %s3109_s13  ;;  %v3493_v37 = vadd.f32 %v2726_v59, %v3388_v50 }
 0x161   : > { %v2727_v61 = vpop.f32.mrb[44].mxu0 }
 0x162   : > { %v2728_v62 = vpop.f32.mrb[45].mxu0 }
 0x163   : > { %1288 = vrot.lane.b32.xlu0 %v3430_v15, %s3109_s13  ;;  %1178 = vrot.lane.b32.xlu1 %v3430_v15, %s3108_s15  ;;  %v2729_v63 = vadd.f32 %v2728_v62, %v2727_v61  ;;  %v2730_v47 = vpop.f32.mrb[46].mxu0 }
 0x164   : > { %v2731_v1 = vpop.f32.mrb[47].mxu0 }
 0x165   : > { %v3500_v4 = vadd.f32 %v3376_v46, %v2729_v63  ;;  %v2732_v6 = vadd.f32 %v2731_v1, %v2730_v47 }
 0x167   : > { %1398 = vrot.lane.b32.xlu0 %v3430_v15, %s3106_s8  ;;  %1070 = vrot.lane.b32.xlu1 %v3437_v16, %s3107_s9  ;;  %v3507_v50 = vadd.f32 %v3386_v49, %v2732_v6 }
 0x169   : > { %v2733_v9 = vpop.f32.mrb[48].mxu0 }
 0x16a   : > { %v2734_v10 = vpop.f32.mrb[49].mxu0 }
 0x16b   : > { %1290 = vrot.lane.b32.xlu0 %v3437_v16, %s3109_s13  ;;  %1180 = vrot.lane.b32.xlu1 %v3437_v16, %s3108_s15  ;;  %v2735_v46 = vadd.f32 %v2734_v10, %v2733_v9  ;;  %v2736_v13 = vpop.f32.mrb[50].mxu0 }
 0x16c   : > { %v2737_v14 = vpop.f32.mrb[51].mxu0 }
 0x16d   : > { %v2738_v17 = vadd.f32 %v2737_v14, %v2736_v13  ;;  %v3514_v18 = vadd.f32 %v2735_v46, %v3419_v5 }
 0x16f   : > { %1182 = vrot.lane.b32.xlu0 %v3444_v27, %s3108_s15  ;;  %1400 = vrot.lane.b32.xlu1 %v3437_v16, %s3106_s8  ;;  %v3521_v49 = vadd.f32 %v2738_v17, %v3427_v11 }
 0x171   : > { %v2739_v19 = vpop.f32.mrb[52].mxu0 }
 0x172   : > { %v2740_v21 = vpop.f32.mrb[53].mxu0 }
 0x173   : > { %1072 = vrot.lane.b32.xlu0 %v3444_v27, %s3107_s9  ;;  %1402 = vrot.lane.b32.xlu1 %v3444_v27, %s3106_s8  ;;  %v2741_v23 = vadd.f32 %v2740_v21, %v2739_v19  ;;  %v2742_v5 = vpop.f32.mrb[54].mxu0 }
 0x174   : > { %v2743_v28 = vpop.f32.mrb[55].mxu0 }
 0x175   : > { %v3528_v29 = vadd.f32 %v3417_v3, %v2741_v23  ;;  %v2744_v30 = vadd.f32 %v2743_v28, %v2742_v5 }
 0x177   : > { %1074 = vrot.lane.b32.xlu0 %v3451_v26, %s3107_s9  ;;  %1292 = vrot.lane.b32.xlu1 %v3444_v27, %s3109_s13  ;;  %v3535_v11 = vadd.f32 %v3421_v7, %v2744_v30 }
 0x17b   : > { %1184 = vrot.lane.b32.xlu0 %v3451_v26, %s3108_s15  ;;  %1294 = vrot.lane.b32.xlu1 %v3451_v26, %s3109_s13 }
 0x17f   : > { %1186 = vrot.lane.b32.xlu0 %v3458_v40, %s3108_s15  ;;  %1404 = vrot.lane.b32.xlu1 %v3451_v26, %s3106_s8 }
 0x181   : > { %v3549_v3 = vpop.permute.xlu1 %1430 }
 0x182   : > { %4401 = vst [vmem:[#allocation7_spill] sm:$0xff] %v3549_v3 }
 0x183   : > { %1076 = vrot.lane.b32.xlu0 %v3458_v40, %s3107_s9  ;;  %1406 = vrot.lane.b32.xlu1 %v3458_v40, %s3106_s8  ;;  %v3551_v7 = vpop.permute.xlu0 %1046 }
 0x184   : > { %4402 = vst [vmem:[#allocation8_spill] sm:$0xff] %v3551_v7 }
 0x187   : > { %1078 = vrot.lane.b32.xlu0 %v3465_v25, %s3107_s9  ;;  %1296 = vrot.lane.b32.xlu1 %v3458_v40, %s3109_s13 }
 0x189   : > { %v3557_v22 = vpop.permute.xlu0 %1158  ;;  %v3559_v31 = vpop.permute.xlu1 %1048 }
 0x18a   : > { %4403 = vst [vmem:[#allocation9_spill] sm:$0xff] %v3557_v22 }
 0x18b   : > { %1188 = vrot.lane.b32.xlu0 %v3465_v25, %s3108_s15  ;;  %1298 = vrot.lane.b32.xlu1 %v3465_v25, %s3109_s13 }
 0x18d   : > { %v1051_v33 = vpop.permute.xlu0 %1050  ;;  %v3565_v39 = vpop.permute.xlu1 %1160 }
 0x18e   : > { %4404 = vst [vmem:[#allocation10_spill] sm:$0xff] %v3565_v39 }
 0x18f   : > { %1190 = vrot.lane.b32.xlu0 %v3472_v51, %s3108_s15  ;;  %1408 = vrot.lane.b32.xlu1 %v3465_v25, %s3106_s8 }
 0x191   : > { %v3571_v41 = vpop.permute.xlu0 %1270  ;;  %v3573_v42 = vpop.permute.xlu1 %1272 }
 0x192   : > { %4405 = vst [vmem:[#allocation11_spill] sm:$0xff] %v3571_v41  ;;  %4406 = vst [vmem:[#allocation12_spill] sm:$0xff] %v3573_v42 }
 0x193   : > { %1080 = vrot.lane.b32.xlu0 %v3472_v51, %s3107_s9  ;;  %1410 = vrot.lane.b32.xlu1 %v3472_v51, %s3106_s8 }
 0x195   : > { %v1053_v43 = vpop.permute.xlu0 %1052  ;;  %v1055_v35 = vpop.permute.xlu1 %1054 }
 0x196   : > { %v1133_v28 = vadd.f32 %v1053_v43, %v3340_v24  ;;  %v1134_v30 = vadd.f32 %v1055_v35, %v3354_v32 }
 0x197   : > { %1082 = vrot.lane.b32.xlu0 %v3479_v38, %s3107_s9  ;;  %1300 = vrot.lane.b32.xlu1 %v3472_v51, %s3109_s13 }
 0x199   : > { %v1163_v45 = vpop.permute.xlu0 %1162  ;;  %v1165_v52 = vpop.permute.xlu1 %1164 }
 0x19b   : > { %1192 = vrot.lane.b32.xlu0 %v3479_v38, %s3108_s15  ;;  %1302 = vrot.lane.b32.xlu1 %v3479_v38, %s3109_s13 }
 0x19d   : > { %v3587_v53 = vpop.permute.xlu0 %1382  ;;  %v1275_v54 = vpop.permute.xlu1 %1274 }
 0x19e   : > { %4407 = vst [vmem:[#allocation13_spill] sm:$0xff] %v3587_v53  ;;  %v1132_v53 = vadd.f32 %v1051_v33, %v3334_v20 }
 0x19f   : > { %1194 = vrot.lane.b32.xlu0 %v3486_v60, %s3108_s15  ;;  %1412 = vrot.lane.b32.xlu1 %v3479_v38, %s3106_s8 }
 0x1a0   : > { %v1244_v22 = vadd.f32 %v1163_v45, %v1132_v53  ;;  %v3652_v45 = vld [vmem:[%s4388_s2] ss:$0 sm:$0xff] }
 0x1a1   : > { %v1167_v34 = vpop.permute.xlu0 %1166  ;;  %v3593_v55 = vpop.permute.xlu1 %1384 }
 0x1a2   : > { %4408 = vst [vmem:[#allocation14_spill] sm:$0xff] %v3593_v55  ;;  %v1245_v55 = vadd.f32 %v1165_v52, %v1133_v28  ;;  %v1246_v41 = vadd.f32 %v1167_v34, %v1134_v30  ;;  %v1356_v32 = vadd.f32 %v1275_v54, %v1244_v22 }
 0x1a3   : > { %1084 = vrot.lane.b32.xlu0 %v3486_v60, %s3107_s9  ;;  %1414 = vrot.lane.b32.xlu1 %v3486_v60, %s3106_s8 }
 0x1a5   : > { %v1277_v56 = vpop.permute.xlu0 %1276  ;;  %v1057_v59 = vpop.permute.xlu1 %1056 }
 0x1a6   : > { %v1357_v39 = vadd.f32 %v1277_v56, %v1245_v55  ;;  %v1135_v7 = vadd.f32 %v1057_v59, %v3360_v36 }
 0x1a7   : > { %1086 = vrot.lane.b32.xlu0 %v3493_v37, %s3107_s9  ;;  %1304 = vrot.lane.b32.xlu1 %v3486_v60, %s3109_s13 }
 0x1a9   : > { %v1387_v61 = vpop.permute.xlu0 %1386  ;;  %v1169_v62 = vpop.permute.xlu1 %1168 }
 0x1aa   : > { %v1247_v35 = vadd.f32 %v1169_v62, %v1135_v7  ;;  %v1468_v34 = vadd.f32 %v1387_v61, %v1356_v32 }
 0x1ab   : > { %1196 = vrot.lane.b32.xlu0 %v3493_v37, %s3108_s15  ;;  %1306 = vrot.lane.b32.xlu1 %v3493_v37, %s3109_s13 }
 0x1ad   : > { %v1059_v63 = vpop.permute.xlu0 %1058  ;;  %v1279_v47 = vpop.permute.xlu1 %1278 }
 0x1ae   : > { %v1358_v8 = vadd.f32 %v1279_v47, %v1246_v41  ;;  %v1136_v36 = vadd.f32 %v1059_v63, %v3374_v44  ;;  %v3665_v44 = vadd.f32 %v3652_v45, %v1468_v34 }
 0x1af   : > { %1198 = vrot.lane.b32.xlu0 %v3500_v4, %s3108_s15  ;;  %1416 = vrot.lane.b32.xlu1 %v3493_v37, %s3106_s8 }
 0x1b1   : > { %v1281_v1 = vpop.permute.xlu0 %1280  ;;  %v1389_v6 = vpop.permute.xlu1 %1388 }
 0x1b2   : > { %v1469_v43 = vadd.f32 %v1389_v6, %v1357_v39  ;;  %v1359_v41 = vadd.f32 %v1281_v1, %v1247_v35 }
 0x1b3   : > { %1088 = vrot.lane.b32.xlu0 %v3500_v4, %s3107_s9  ;;  %1418 = vrot.lane.b32.xlu1 %v3500_v4, %s3106_s8 }
 0x1b5   : > { %v3615_v9 = vpop.permute.xlu0 %1062  ;;  %v1061_v10 = vpop.permute.xlu1 %1060 }
 0x1b6   : > { %v1137_v53 = vadd.f32 %v1061_v10, %v3380_v48  ;;  %v1138_v28 = vadd.f32 %v3615_v9, %v3395_v57 }
 0x1b7   : > { %1090 = vrot.lane.b32.xlu0 %v3507_v50, %s3107_s9  ;;  %1308 = vrot.lane.b32.xlu1 %v3500_v4, %s3109_s13 }
 0x1b9   : > { %v1173_v46 = vpop.permute.xlu0 %1172  ;;  %v1171_v13 = vpop.permute.xlu1 %1170 }
 0x1ba   : > { %v1249_v7 = vadd.f32 %v1173_v46, %v1137_v53  ;;  %v1248_v22 = vadd.f32 %v1171_v13, %v1136_v36 }
 0x1bb   : > { %1200 = vrot.lane.b32.xlu0 %v3507_v50, %s3108_s15  ;;  %1310 = vrot.lane.b32.xlu1 %v3507_v50, %s3109_s13 }
 0x1bd   : > { %v1283_v14 = vpop.permute.xlu0 %1282  ;;  %v1391_v17 = vpop.permute.xlu1 %1390 }
 0x1be   : > { %v1470_v24 = vadd.f32 %v1391_v17, %v1358_v8  ;;  %v1504_v8 = vadd.f32 %v3652_v45, %v1469_v43  ;;  %v1360_v48 = vadd.f32 %v1283_v14, %v1248_v22 }
 0x1bf   : > { %1202 = vrot.lane.b32.xlu0 %v3514_v18, %s3108_s15  ;;  %1420 = vrot.lane.b32.xlu1 %v3507_v50, %s3106_s8 }
 0x1c0   : > { %v1505_v39 = vadd.f32 %v3652_v45, %v1470_v24  ;;  %v1531_v61 = vmax.f32 %v3665_v44, %v1504_v8 }
 0x1c1   : > { %v1393_v19 = vpop.permute.xlu0 %1392  ;;  %v3629_v21 = vpop.permute.xlu1 %1064 }
 0x1c2   : > { %v1471_v54 = vadd.f32 %v1393_v19, %v1359_v41  ;;  %v1532_v62 = vmax.f32 %v1504_v8, %v1505_v39  ;;  %v1139_v30 = vadd.f32 %v3629_v21, %v3401_v58  ;;  %v2066_v8 = vld [vmem:[%s4389_s3 + $0x8] sm:$0xff] }
 0x1c3   : > { %1092 = vrot.lane.b32.xlu0 %v3514_v18, %s3107_s9  ;;  %1422 = vrot.lane.b32.xlu1 %v3514_v18, %s3106_s8 }
 0x1c4   : > { %v1506_v24 = vadd.f32 %v3652_v45, %v1471_v54  ;;  %v3679_v10 = vmax.f32 %v1532_v62, 0.0 }
 0x1c5   : > { %v3635_v23 = vpop.permute.xlu0 %1066  ;;  %v1175_v5 = vpop.permute.xlu1 %1174 }
 0x1c6   : > { %v1533_v46 = vmax.f32 %v1505_v39, %v1506_v24  ;;  %v1250_v32 = vadd.f32 %v1175_v5, %v1138_v28  ;;  %v1140_v39 = vadd.f32 %v3635_v23, %v3408_v0  ;;  %v2067_v0 = vld [vmem:[%s4389_s3 + $0x10] sm:$0xff]  ;;  %v2068_v23 = vld [vmem:[%s4389_s3 + $0x18] sm:$0x3f] }
 0x1c7   : > { %1094 = vrot.lane.b32.xlu0 %v3521_v49, %s3107_s9  ;;  %1312 = vrot.lane.b32.xlu1 %v3514_v18, %s3109_s13 }
 0x1c8   : > { %v3693_v43 = vmax.f32 %v1533_v46, 0.0 }
 0x1c9   : > { %v1177_v3 = vpop.permute.xlu0 %1176  ;;  %v1285_v42 = vpop.permute.xlu1 %1284 }
 0x1ca   : > { %v1361_v59 = vadd.f32 %v1285_v42, %v1249_v7  ;;  %v3677_v42 = vmax.f32 %v1531_v61, 0.0  ;;  %v1251_v36 = vadd.f32 %v1177_v3, %v1139_v30  ;;  %v2065_v3 = vld [vmem:[%s4389_s3] sm:$0xff] }
 0x1cb   : > { %1204 = vrot.lane.b32.xlu0 %v3521_v49, %s3108_s15  ;;  %1314 = vrot.lane.b32.xlu1 %v3521_v49, %s3109_s13  ;;  %v2897_v22 = vpack.c.bf16 %v2066_v8, %v2065_v3 }
 0x1cd   : > { %v1397_v33 = vpop.permute.xlu0 %1396  ;;  %v1395_v52 = vpop.permute.xlu1 %1394  ;;  %2898 = vmatprep.subr.bf16.mxu1 %v2897_v22 }
 0x1ce   : > { %v1473_v63 = vadd.f32 %v1397_v33, %v1361_v59  ;;  %v1472_v47 = vadd.f32 %v1395_v52, %v1360_v48  ;;  %2900 = vmatpush3.bf16.msra.mxu1 %v2897_v22 }
 0x1cf   : > { %1206 = vrot.lane.b32.xlu0 %v3528_v29, %s3108_s15  ;;  %1424 = vrot.lane.b32.xlu1 %v3521_v49, %s3106_s8 }
 0x1d0   : > { %v1508_v13 = vadd.f32 %v3652_v45, %v1473_v63  ;;  %v1507_v14 = vadd.f32 %v3652_v45, %v1472_v47  ;;  %v2901_v63 = vpack.c.bf16 %v2068_v23, %v2067_v0 }
 0x1d1   : > { %v3662_v55 = vpop.permute.xlu0 %1068  ;;  %v1287_v56 = vpop.permute.xlu1 %1286 }
 0x1d2   : > { %v1534_v35 = vmax.f32 %v1506_v24, %v1507_v14  ;;  %v1535_v33 = vmax.f32 %v1507_v14, %v1508_v13  ;;  %v1362_v41 = vadd.f32 %v1287_v56, %v1250_v32  ;;  %2903 = vmatprep.subr.msk.bf16.mxu1 %vm2902_vm3, %v2901_v63 }
 0x1d3   : > { %1316 = vrot.lane.b32.xlu0 %v3528_v29, %s3109_s13  ;;  %1426 = vrot.lane.b32.xlu1 %v3528_v29, %s3106_s8 }
 0x1d4   : > { %v3699_v53 = vmax.f32 %v1534_v35, 0.0  ;;  %v3701_v58 = vmax.f32 %v1535_v33, 0.0  ;;  %2906 = vmatpush3.bf16.msk.msra.mxu1 %vm2902_vm3, %v2901_v63 }
 0x1d5   : > { %v1289_v1 = vpop.permute.xlu0 %1288  ;;  %v1179_v6 = vpop.permute.xlu1 %1178 }
 0x1d6   : > { %v1363_v57 = vadd.f32 %v1289_v1, %v1251_v36  ;;  %v1252_v48 = vadd.f32 %v1179_v6, %v1140_v39 }
 0x1d7   : > { %1428 = vrot.lane.b32.xlu0 %v3535_v11, %s3106_s8  ;;  %1318 = vrot.lane.b32.xlu1 %v3535_v11, %s3109_s13 }
 0x1d9   : > { %v1399_v17 = vpop.permute.xlu0 %1398  ;;  %v3683_v19 = vpop.permute.xlu1 %1070 }
 0x1da   : > { %v1474_v9 = vadd.f32 %v1399_v17, %v1362_v41  ;;  %v1141_v17 = vadd.f32 %v3662_v55, %v3415_v2  ;;  %v1142_v2 = vadd.f32 %v3683_v19, %v3430_v15 }
 0x1db   : > { %1613 = vrot.lane.b32.xlu0 %v3677_v42, %s3110_s18  ;;  %1615 = vrot.lane.b32.xlu1 %v3679_v10, %s3110_s18 }
 0x1dc   : > { %v1509_v54 = vadd.f32 %v3652_v45, %v1474_v9 }
 0x1dd   : > { %v1291_v52 = vpop.permute.xlu0 %1290  ;;  %v1181_v34 = vpop.permute.xlu1 %1180 }
 0x1de   : > { %v1364_v24 = vadd.f32 %v1291_v52, %v1252_v48  ;;  %v1536_v1 = vmax.f32 %v1508_v13, %v1509_v54  ;;  %v1253_v35 = vadd.f32 %v1181_v34, %v1141_v17 }
 0x1df   : > { %1697 = vrot.lane.b32.xlu0 %v3693_v43, %s3111_s19  ;;  %1617 = vrot.lane.b32.xlu1 %v3693_v43, %s3110_s18 }
 0x1e0   : > { %v3735_v28 = vmax.f32 %v1536_v1, 0.0 }
 0x1e1   : > { %v1183_v21 = vpop.permute.xlu0 %1182  ;;  %v1401_v5 = vpop.permute.xlu1 %1400 }
 0x1e2   : > { %v1475_v7 = vadd.f32 %v1401_v5, %v1363_v57  ;;  %v1254_v34 = vadd.f32 %v1183_v21, %v1142_v2 }
 0x1e3   : > { %1781 = vrot.lane.b32.xlu0 %v3701_v58, %s3112_s23  ;;  %1699 = vrot.lane.b32.xlu1 %v3699_v53, %s3111_s19 }
 0x1e4   : > { %v1510_v56 = vadd.f32 %v3652_v45, %v1475_v7 }
 0x1e5   : > { %v1073_v59 = vpop.permute.xlu0 %1072  ;;  %v1403_v61 = vpop.permute.xlu1 %1402 }
 0x1e6   : > { %v1537_v62 = vmax.f32 %v1509_v54, %v1510_v56  ;;  %v1476_v6 = vadd.f32 %v1403_v61, %v1364_v24  ;;  %v1143_v21 = vadd.f32 %v1073_v59, %v3437_v16 }
 0x1e7   : > { %1701 = vrot.lane.b32.xlu0 %v3701_v58, %s3111_s19  ;;  %1619 = vrot.lane.b32.xlu1 %v3699_v53, %s3110_s18 }
 0x1e8   : > { %v3727_v47 = vmax.f32 %v1537_v62, 0.0  ;;  %v1511_v30 = vadd.f32 %v3652_v45, %v1476_v6 }
 0x1e9   : > { %v1075_v46 = vpop.permute.xlu0 %1074  ;;  %v1293_v14 = vpop.permute.xlu1 %1292 }
 0x1ea   : > { %v1365_v33 = vadd.f32 %v1293_v14, %v1253_v35  ;;  %v1538_v52 = vmax.f32 %v1510_v56, %v1511_v30  ;;  %v1144_v1 = vadd.f32 %v1075_v46, %v3444_v27 }
 0x1eb   : > { %1621 = vrot.lane.b32.xlu1 %v3701_v58, %s3110_s18  ;;  %1865 = vrot.lane.b32.xlu0 %v3727_v47, %s3114_s20 }
 0x1ec   : > { %v3749_v9 = vmax.f32 %v1538_v52, 0.0 }
 0x1ed   : > { %v1185_v13 = vpop.permute.xlu0 %1184  ;;  %v1295_v32 = vpop.permute.xlu1 %1294 }
 0x1ee   : > { %v1366_v7 = vadd.f32 %v1295_v32, %v1254_v34  ;;  %v1255_v61 = vadd.f32 %v1185_v13, %v1143_v21 }
 0x1ef   : > { %1783 = vrot.lane.b32.xlu1 %v3735_v28, %s3112_s23  ;;  %1785 = vrot.lane.b32.xlu0 %v3727_v47, %s3112_s23 }
 0x1f1   : > { %v1187_v36 = vpop.permute.xlu0 %1186  ;;  %v1405_v41 = vpop.permute.xlu1 %1404 }
 0x1f2   : > { %v1477_v57 = vadd.f32 %v1405_v41, %v1365_v33  ;;  %v1256_v59 = vadd.f32 %v1187_v36, %v1144_v1 }
 0x1f3   : > { %1703 = vrot.lane.b32.xlu1 %v3735_v28, %s3111_s19  ;;  %1705 = vrot.lane.b32.xlu0 %v3727_v47, %s3111_s19 }
 0x1f4   : > { %v1512_v55 = vadd.f32 %v3652_v45, %v1477_v57 }
 0x1f5   : > { %v1077_v5 = vpop.permute.xlu0 %1076  ;;  %v1407_v3 = vpop.permute.xlu1 %1406 }
 0x1f6   : > { %v1539_v8 = vmax.f32 %v1511_v30, %v1512_v55  ;;  %v1478_v19 = vadd.f32 %v1407_v3, %v1366_v7  ;;  %v1145_v33 = vadd.f32 %v1077_v5, %v3451_v26 }
 0x1f7   : > { %1623 = vrot.lane.b32.xlu1 %v3735_v28, %s3110_s18  ;;  %1867 = vrot.lane.b32.xlu0 %v3749_v9, %s3114_s20 }
 0x1f8   : > { %v3755_v15 = vmax.f32 %v1539_v8, 0.0  ;;  %v1513_v54 = vadd.f32 %v3652_v45, %v1478_v19 }
 0x1f9   : > { %v1079_v22 = vpop.permute.xlu0 %1078  ;;  %v1297_v39 = vpop.permute.xlu1 %1296 }
 0x1fa   : > { %v1367_v0 = vadd.f32 %v1297_v39, %v1255_v61  ;;  %v1540_v23 = vmax.f32 %v1512_v55, %v1513_v54  ;;  %v1146_v7 = vadd.f32 %v1079_v22, %v3458_v40 }
 0x1fb   : > { %1625 = vrot.lane.b32.xlu1 %v3727_v47, %s3110_s18  ;;  %1869 = vrot.lane.b32.xlu0 %v3755_v15, %s3114_s20 }
 0x1fc   : > { %v3773_v6 = vmax.f32 %v1540_v23, 0.0 }
 0x1fd   : > { %v1189_v56 = vpop.permute.xlu0 %1188  ;;  %v1299_v48 = vpop.permute.xlu1 %1298 }
 0x1fe   : > { %v1368_v13 = vadd.f32 %v1299_v48, %v1256_v59  ;;  %v1257_v57 = vadd.f32 %v1189_v56, %v1145_v33 }
 0x1ff   : > { %1787 = vrot.lane.b32.xlu1 %v3749_v9, %s3112_s23  ;;  %1789 = vrot.lane.b32.xlu0 %v3755_v15, %s3112_s23 }
 0x201   : > { %v1191_v62 = vpop.permute.xlu0 %1190  ;;  %v1409_v24 = vpop.permute.xlu1 %1408 }
 0x202   : > { %v1479_v63 = vadd.f32 %v1409_v24, %v1367_v0  ;;  %v1258_v5 = vadd.f32 %v1191_v62, %v1146_v7 }
 0x203   : > { %1707 = vrot.lane.b32.xlu1 %v3749_v9, %s3111_s19  ;;  %1709 = vrot.lane.b32.xlu0 %v3755_v15, %s3111_s19 }
 0x204   : > { %v1514_v16 = vadd.f32 %v3652_v45, %v1479_v63 }
 0x205   : > { %v1081_v14 = vpop.permute.xlu0 %1080  ;;  %v1411_v17 = vpop.permute.xlu1 %1410 }
 0x206   : > { %v1541_v30 = vmax.f32 %v1513_v54, %v1514_v16  ;;  %v1480_v46 = vadd.f32 %v1411_v17, %v1368_v13  ;;  %v1147_v0 = vadd.f32 %v1081_v14, %v3465_v25 }
 0x207   : > { %1627 = vrot.lane.b32.xlu1 %v3749_v9, %s3110_s18  ;;  %1871 = vrot.lane.b32.xlu0 %v3773_v6, %s3114_s20 }
 0x208   : > { %v3779_v27 = vmax.f32 %v1541_v30, 0.0  ;;  %v1515_v52 = vadd.f32 %v3652_v45, %v1480_v46 }
 0x209   : > { %v1083_v32 = vpop.permute.xlu0 %1082  ;;  %v1301_v35 = vpop.permute.xlu1 %1300 }
 0x20a   : > { %v1369_v2 = vadd.f32 %v1301_v35, %v1257_v57  ;;  %v1542_v55 = vmax.f32 %v1514_v16, %v1515_v52  ;;  %v1148_v13 = vadd.f32 %v1083_v32, %v3472_v51 }
 0x20b   : > { %1629 = vrot.lane.b32.xlu1 %v3755_v15, %s3110_s18  ;;  %1873 = vrot.lane.b32.xlu0 %v3779_v27, %s3114_s20 }
 0x20c   : > { %v3797_v19 = vmax.f32 %v1542_v55, 0.0 }
 0x20d   : > { %v1193_v36 = vpop.permute.xlu0 %1192  ;;  %v1303_v41 = vpop.permute.xlu1 %1302 }
 0x20e   : > { %v1370_v56 = vadd.f32 %v1303_v41, %v1258_v5  ;;  %v1259_v63 = vadd.f32 %v1193_v36, %v1147_v0 }
 0x20f   : > { %1791 = vrot.lane.b32.xlu1 %v3773_v6, %s3112_s23  ;;  %1793 = vrot.lane.b32.xlu0 %v3779_v27, %s3112_s23 }
 0x211   : > { %v1195_v34 = vpop.permute.xlu0 %1194  ;;  %v1413_v3 = vpop.permute.xlu1 %1412 }
 0x212   : > { %v1481_v8 = vadd.f32 %v1413_v3, %v1369_v2  ;;  %v1260_v14 = vadd.f32 %v1195_v34, %v1148_v13 }
 0x213   : > { %1711 = vrot.lane.b32.xlu1 %v3773_v6, %s3111_s19  ;;  %1713 = vrot.lane.b32.xlu0 %v3779_v27, %s3111_s19 }
 0x214   : > { %v1516_v26 = vadd.f32 %v3652_v45, %v1481_v8 }
 0x215   : > { %v1085_v39 = vpop.permute.xlu0 %1084  ;;  %v1415_v21 = vpop.permute.xlu1 %1414 }
 0x216   : > { %v1543_v54 = vmax.f32 %v1515_v52, %v1516_v26  ;;  %v1482_v22 = vadd.f32 %v1415_v21, %v1370_v56  ;;  %v1149_v2 = vadd.f32 %v1085_v39, %v3479_v38 }
 0x217   : > { %1631 = vrot.lane.b32.xlu1 %v3773_v6, %s3110_s18  ;;  %1875 = vrot.lane.b32.xlu0 %v3797_v19, %s3114_s20 }
 0x218   : > { %v3803_v40 = vmax.f32 %v1543_v54, 0.0  ;;  %v1517_v23 = vadd.f32 %v3652_v45, %v1482_v22 }
 0x219   : > { %v1087_v48 = vpop.permute.xlu0 %1086  ;;  %v1305_v61 = vpop.permute.xlu1 %1304 }
 0x21a   : > { %v1371_v1 = vadd.f32 %v1305_v61, %v1259_v63  ;;  %v1544_v16 = vmax.f32 %v1516_v26, %v1517_v23  ;;  %v1150_v56 = vadd.f32 %v1087_v48, %v3486_v60 }
 0x21b   : > { %1633 = vrot.lane.b32.xlu1 %v3779_v27, %s3110_s18  ;;  %1877 = vrot.lane.b32.xlu0 %v3803_v40, %s3114_s20 }
 0x21c   : > { %v3821_v46 = vmax.f32 %v1544_v16, 0.0 }
 0x21d   : > { %v1197_v62 = vpop.permute.xlu0 %1196  ;;  %v1307_v24 = vpop.permute.xlu1 %1306 }
 0x21e   : > { %v1372_v36 = vadd.f32 %v1307_v24, %v1260_v14  ;;  %v1261_v8 = vadd.f32 %v1197_v62, %v1149_v2 }
 0x21f   : > { %1795 = vrot.lane.b32.xlu1 %v3797_v19, %s3112_s23  ;;  %1797 = vrot.lane.b32.xlu0 %v3803_v40, %s3112_s23 }
 0x221   : > { %v1199_v59 = vpop.permute.xlu0 %1198  ;;  %v1417_v17 = vpop.permute.xlu1 %1416 }
 0x222   : > { %v1483_v30 = vadd.f32 %v1417_v17, %v1371_v1  ;;  %v1262_v39 = vadd.f32 %v1199_v59, %v1150_v56 }
 0x223   : > { %1715 = vrot.lane.b32.xlu1 %v3797_v19, %s3111_s19  ;;  %1717 = vrot.lane.b32.xlu0 %v3803_v40, %s3111_s19 }
 0x224   : > { %v1518_v25 = vadd.f32 %v3652_v45, %v1483_v30 }
 0x225   : > { %v1089_v35 = vpop.permute.xlu0 %1088  ;;  %v1419_v33 = vpop.permute.xlu1 %1418 }
 0x226   : > { %v1545_v52 = vmax.f32 %v1517_v23, %v1518_v25  ;;  %v1484_v32 = vadd.f32 %v1419_v33, %v1372_v36  ;;  %v1151_v1 = vadd.f32 %v1089_v35, %v3493_v37 }
 0x227   : > { %1635 = vrot.lane.b32.xlu1 %v3797_v19, %s3110_s18  ;;  %1879 = vrot.lane.b32.xlu0 %v3821_v46, %s3114_s20 }
 0x228   : > { %v3827_v51 = vmax.f32 %v1545_v52, 0.0  ;;  %v1519_v55 = vadd.f32 %v3652_v45, %v1484_v32 }
 0x229   : > { %v1091_v41 = vpop.permute.xlu0 %1090  ;;  %v1309_v57 = vpop.permute.xlu1 %1308 }
 0x22a   : > { %v1373_v7 = vadd.f32 %v1309_v57, %v1261_v8  ;;  %v1546_v26 = vmax.f32 %v1518_v25, %v1519_v55  ;;  %v1152_v13 = vadd.f32 %v1091_v41, %v3500_v4 }
 0x22b   : > { %1637 = vrot.lane.b32.xlu1 %v3803_v40, %s3110_s18  ;;  %1881 = vrot.lane.b32.xlu0 %v3827_v51, %s3114_s20 }
 0x22c   : > { %v3845_v22 = vmax.f32 %v1546_v26, 0.0 }
 0x22d   : > { %v1201_v34 = vpop.permute.xlu0 %1200  ;;  %v1311_v3 = vpop.permute.xlu1 %1310 }
 0x22e   : > { %v1374_v62 = vadd.f32 %v1311_v3, %v1262_v39  ;;  %v1263_v30 = vadd.f32 %v1201_v34, %v1151_v1  ;;  %v4414_v1 = vld [vmem:[#allocation7_spill] sm:$0xff] }
 0x22f   : > { %1799 = vrot.lane.b32.xlu1 %v3821_v46, %s3112_s23  ;;  %1801 = vrot.lane.b32.xlu0 %v3827_v51, %s3112_s23 }
 0x231   : > { %v1203_v5 = vpop.permute.xlu0 %1202  ;;  %v1421_v21 = vpop.permute.xlu1 %1420 }
 0x232   : > { %v1485_v54 = vadd.f32 %v1421_v21, %v1373_v7  ;;  %v1264_v36 = vadd.f32 %v1203_v5, %v1152_v13  ;;  %v1131_v7 = vadd.f32 %v3559_v31, %v3326_v12  ;;  %v4409_v21 = vld [vmem:[#allocation5_spill] sm:$0xff] }
 0x233   : > { %1719 = vrot.lane.b32.xlu1 %v3821_v46, %s3111_s19  ;;  %1721 = vrot.lane.b32.xlu0 %v3827_v51, %s3111_s19 }
 0x234   : > { %v1520_v38 = vadd.f32 %v3652_v45, %v1485_v54  ;;  %v4410_v54 = vld [vmem:[#allocation8_spill] sm:$0xff] }
 0x235   : > { %v1093_v61 = vpop.permute.xlu0 %1092  ;;  %v1423_v0 = vpop.permute.xlu1 %1422  ;;  %v1130_v56 = vadd.f32 %v4410_v54, %v4409_v21 }
 0x236   : > { %v1547_v23 = vmax.f32 %v1519_v55, %v1520_v38  ;;  %v1486_v48 = vadd.f32 %v1423_v0, %v1374_v62  ;;  %v1153_v37 = vadd.f32 %v1093_v61, %v3507_v50  ;;  %v4412_v62 = vld [vmem:[#allocation9_spill] sm:$0xff] }
 0x237   : > { %1639 = vrot.lane.b32.xlu1 %v3821_v46, %s3110_s18  ;;  %1883 = vrot.lane.b32.xlu0 %v3845_v22, %s3114_s20 }
 0x238   : > { %v3851_v60 = vmax.f32 %v1547_v23, 0.0  ;;  %v1521_v16 = vadd.f32 %v3652_v45, %v1486_v48  ;;  %v1242_v48 = vadd.f32 %v4412_v62, %v1130_v56 }
 0x239   : > { %v1095_v24 = vpop.permute.xlu0 %1094  ;;  %v1313_v63 = vpop.permute.xlu1 %1312 }
 0x23a   : > { %v1375_v25 = vadd.f32 %v1313_v63, %v1263_v30  ;;  %v1548_v14 = vmax.f32 %v1520_v38, %v1521_v16  ;;  %v1154_v55 = vadd.f32 %v1095_v24, %v3514_v18  ;;  %v4411_v18 = vld [vmem:[#allocation10_spill] sm:$0xff]  ;;  %v4413_v24 = vld [vmem:[#allocation12_spill] sm:$0xff] }
 0x23b   : > { %1641 = vrot.lane.b32.xlu1 %v3827_v51, %s3110_s18  ;;  %1885 = vrot.lane.b32.xlu0 %v3851_v60, %s3114_s20  ;;  %v1243_v38 = vadd.f32 %v4411_v18, %v1131_v7  ;;  %v4416_v30 = vld [vmem:[#allocation14_spill] sm:$0xff] }
 0x23c   : > { %v3870_v2 = vmax.f32 %v1548_v14, 0.0 }
 0x23d   : > { %v1205_v59 = vpop.permute.xlu0 %1204  ;;  %v1315_v17 = vpop.permute.xlu1 %1314  ;;  %v1355_v63 = vadd.f32 %v4413_v24, %v1243_v38 }
 0x23e   : > { %v1376_v35 = vadd.f32 %v1315_v17, %v1264_v36  ;;  %v1265_v34 = vadd.f32 %v1205_v59, %v1153_v37  ;;  %v4415_v59 = vld [vmem:[#allocation11_spill] sm:$0xff] }
 0x23f   : > { %1803 = vrot.lane.b32.xlu1 %v3845_v22, %s3112_s23  ;;  %1805 = vrot.lane.b32.xlu0 %v3851_v60, %s3112_s23  ;;  %v1354_v17 = vadd.f32 %v4415_v59, %v1242_v48  ;;  %v1467_v13 = vadd.f32 %v4416_v30, %v1355_v63 }
 0x241   : > { %v1207_v33 = vpop.permute.xlu0 %1206  ;;  %v1425_v52 = vpop.permute.xlu1 %1424 }
 0x242   : > { %v1487_v32 = vadd.f32 %v1425_v52, %v1375_v25  ;;  %v1266_v50 = vadd.f32 %v1207_v33, %v1154_v55 }
 0x243   : > { %1723 = vrot.lane.b32.xlu1 %v3845_v22, %s3111_s19  ;;  %1725 = vrot.lane.b32.xlu0 %v3851_v60, %s3111_s19 }
 0x244   : > { %v1522_v57 = vadd.f32 %v3652_v45, %v1487_v32  ;;  %v4417_v32 = vld [vmem:[#allocation13_spill] sm:$0xff] }
 0x245   : > { %v1317_v4 = vpop.permute.xlu0 %1316  ;;  %v1427_v41 = vpop.permute.xlu1 %1426  ;;  %v1466_v37 = vadd.f32 %v4417_v32, %v1354_v17 }
 0x246   : > { %v1549_v3 = vmax.f32 %v1521_v16, %v1522_v57  ;;  %v1488_v8 = vadd.f32 %v1427_v41, %v1376_v35  ;;  %v1377_v5 = vadd.f32 %v1317_v4, %v1265_v34  ;;  %v1502_v35 = vadd.f32 %v3652_v45, %v1467_v13 }
 0x247   : > { %1643 = vrot.lane.b32.xlu1 %v3845_v22, %s3110_s18  ;;  %1887 = vrot.lane.b32.xlu0 %v3870_v2, %s3114_s20 }
 0x248   : > { %v3879_v26 = vmax.f32 %v1549_v3, 0.0  ;;  %v1523_v39 = vadd.f32 %v3652_v45, %v1488_v8  ;;  %v3908_v3 = vadd.f32 %v3652_v45, %v1466_v37  ;;  %v1530_v48 = vmax.f32 %v1502_v35, %v3665_v44 }
 0x249   : > { %v1429_v61 = vpop.permute.xlu0 %1428  ;;  %v1319_v0 = vpop.permute.xlu1 %1318 }
 0x24a   : > { %v1489_v31 = vadd.f32 %v1429_v61, %v1377_v5  ;;  %v1378_v23 = vadd.f32 %v1319_v0, %v1266_v50  ;;  %v1550_v25 = vmax.f32 %v1522_v57, %v1523_v39  ;;  %v1529_v8 = vmax.f32 %v3908_v3, %v1502_v35 }
 0x24b   : > { %1807 = vrot.lane.b32.xlu1 %v3870_v2, %s3112_s23  ;;  %1889 = vrot.lane.b32.xlu0 %v3879_v26, %s3114_s20 }
 0x24c   : > { %v1490_v16 = vadd.f32 %v4414_v1, %v1378_v23  ;;  %v1524_v14 = vadd.f32 %v3652_v45, %v1489_v31  ;;  %v3904_v4 = vmax.f32 %v1550_v25, 0.0  ;;  %v3923_v56 = vmax.f32 %v1529_v8, 0.0 }
 0x24d   : > { %v1614_v33 = vpop.permute.xlu0 %1613  ;;  %v1616_v52 = vpop.permute.xlu1 %1615  ;;  %v3944_v1 = vmax.f32 %v1530_v48, 0.0 }
 0x24e   : > { %v3896_v36 = vadd.f32 %v3652_v45, %v1490_v16  ;;  %v1551_v57 = vmax.f32 %v1523_v39, %v1524_v14  ;;  %v1950_v39 = vsel %vm1949_vm4, %v3923_v56, %v1614_v33 }
 0x24f   : > { %1727 = vrot.lane.b32.xlu1 %v3870_v2, %s3111_s19  ;;  %1809 = vrot.lane.b32.xlu0 %v3879_v26, %s3112_s23  ;;  %v1951_v17 = vsel %vm1949_vm4, %v3944_v1, %v1616_v52 }
 0x250   : > { %v1552_v41 = vmax.f32 %v1524_v14, %v3896_v36  ;;  %v3915_v7 = vmax.f32 %v1551_v57, 0.0  ;;  %v4418_v57 = vld [vmem:[#allocation6_spill] sm:$0xff] }
 0x251   : > { %v1698_v55 = vpop.permute.xlu0 %1697  ;;  %v1618_v34 = vpop.permute.xlu1 %1617 }
 0x252   : > { %v3917_v50 = vmax.f32 %v1552_v41, 0.0  ;;  %v1979_v61 = vsel %vm1978_vm5, %v1950_v39, %v1698_v55  ;;  %v1952_v14 = vsel %vm1949_vm4, %v3677_v42, %v1618_v34 }
 0x253   : > { %1811 = vrot.lane.b32.xlu1 %v3904_v4, %s3112_s23  ;;  %1891 = vrot.lane.b32.xlu0 %v3904_v4, %s3114_s20 }
 0x255   : > { %v1782_v5 = vpop.permute.xlu0 %1781  ;;  %v1700_v54 = vpop.permute.xlu1 %1699 }
 0x256   : > { %v2008_v0 = vsel %vm2007_vm6, %v1979_v61, %v1782_v5  ;;  %v1980_v44 = vsel %vm1978_vm5, %v1951_v17, %v1700_v54 }
 0x257   : > { %1893 = vrot.lane.b32.xlu0 %v3915_v7, %s3114_s20  ;;  %1895 = vrot.lane.b32.xlu1 %v3917_v50, %s3114_s20 }
 0x259   : > { %v1702_v18 = vpop.permute.xlu0 %1701  ;;  %v1620_v38 = vpop.permute.xlu1 %1619 }
 0x25a   : > { %v1981_v33 = vsel %vm1978_vm5, %v1952_v14, %v1702_v18  ;;  %v1953_v8 = vsel %vm1949_vm4, %v3679_v10, %v1620_v38 }
 0x25b   : > { %1096 = vrot.lane.b32.xlu0 %v3528_v29, %s3107_s9  ;;  %1098 = vrot.lane.b32.xlu1 %v3535_v11, %s3107_s9 }
 0x25d   : > { %v1866_v31 = vpop.permute.xlu0 %1865  ;;  %v1622_v23 = vpop.permute.xlu1 %1621 }
 0x25e   : > { %v2037_v62 = vsel %vm2036_vm7, %v2008_v0, %v1866_v31  ;;  %v1954_v61 = vsel %vm1949_vm4, %v3693_v43, %v1622_v23 }
 0x25f   : > { %1208 = vrot.lane.b32.xlu0 %v3535_v11, %s3108_s15  ;;  %1210 = vrot.lane.b32.xlu1 %v4409_v21, %s3108_s15 }
 0x260   : > { %2838 = vmatprep.mubr.msk.f32.mxu1 %vm2076_vm8, %v2037_v62 }
 0x261   : > { %v1786_v24 = vpop.permute.xlu0 %1785  ;;  %v1784_v63 = vpop.permute.xlu1 %1783 }
 0x262   : > { %v2009_v30 = vsel %vm2007_vm6, %v1980_v44, %v1784_v63  ;;  %v2010_v52 = vsel %vm2007_vm6, %v1981_v33, %v1786_v24 }
 0x263   : > { %1100 = vrot.lane.b32.xlu0 %v4409_v21, %s3107_s9  ;;  %1320 = vrot.lane.b32.xlu1 %v4409_v21, %s3109_s13 }
 0x265   : > { %v1706_v16 = vpop.permute.xlu0 %1705  ;;  %v1704_v59 = vpop.permute.xlu1 %1703 }
 0x266   : > { %v1983_v38 = vsel %vm1978_vm5, %v1954_v61, %v1706_v16 }
 0x267   : > { %1322 = vrot.lane.b32.xlu0 %v3326_v12, %s3109_s13  ;;  %1212 = vrot.lane.b32.xlu1 %v3326_v12, %s3108_s15 }
 0x269   : > { %v1868_v13 = vpop.permute.xlu0 %1867  ;;  %v1624_v25 = vpop.permute.xlu1 %1623 }
 0x26a   : > { %v2038_v21 = vsel %vm2036_vm7, %v2009_v30, %v1868_v13 }
 0x26b   : > { %1432 = vrot.lane.b32.xlu0 %v3326_v12, %s3106_s8  ;;  %1434 = vrot.lane.b32.xlu1 %v3334_v20, %s3106_s8 }
 0x26c   : > { %2839 = vmatmul.mubr.msk.f32.vlgmr.msra.gmra.mrb[28].mxu1 %vm2076_vm8, %v2038_v21 }
 0x26d   : > { %v1870_v32 = vpop.permute.xlu0 %1869  ;;  %v1626_v37 = vpop.permute.xlu1 %1625 }
 0x26e   : > { %v2039_v35 = vsel %vm2036_vm7, %v2010_v52, %v1870_v32  ;;  %v1956_v14 = vsel %vm1949_vm4, %v3701_v58, %v1626_v37 }
 0x26f   : > { %1324 = vrot.lane.b32.xlu0 %v3334_v20, %s3109_s13  ;;  %1436 = vrot.lane.b32.xlu1 %v4418_v57, %s3106_s8  ;;  %v1982_v20 = vsel %vm1978_vm5, %v1953_v8, %v1704_v59  ;;  %v1955_v59 = vsel %vm1949_vm4, %v3699_v53, %v1624_v25  ;;  %s4344_s13 = scalar_lea.hbm %s4393_s7, %s2642_s16 }
 0x270   : > { %2841 = vmatprep.mubr.msk.f32.mxu1 %vm2076_vm8, %v2039_v35 }
 0x271   : > { %v1790_v12 = vpop.permute.xlu0 %1789  ;;  %v1788_v41 = vpop.permute.xlu1 %1787 }
 0x272   : > { %v2011_v5 = vsel %vm2007_vm6, %v1982_v20, %v1788_v41  ;;  %v2012_v0 = vsel %vm2007_vm6, %v1983_v38, %v1790_v12 }
 0x273   : > { %1645 = vrot.lane.b32.xlu0 %v3851_v60, %s3110_s18  ;;  %1647 = vrot.lane.b32.xlu1 %v3870_v2, %s3110_s18 }
 0x275   : > { %v1710_v55 = vpop.permute.xlu0 %1709  ;;  %v1708_v34 = vpop.permute.xlu1 %1707 }
 0x276   : > { %v1984_v17 = vsel %vm1978_vm5, %v1955_v59, %v1708_v34  ;;  %v1985_v33 = vsel %vm1978_vm5, %v1956_v14, %v1710_v55 }
 0x277   : > { %1729 = vrot.lane.b32.xlu0 %v3879_v26, %s3111_s19  ;;  %1731 = vrot.lane.b32.xlu1 %v3904_v4, %s3111_s19 }
 0x279   : > { %v1872_v54 = vpop.permute.xlu0 %1871  ;;  %v1628_v18 = vpop.permute.xlu1 %1627 }
 0x27a   : > { %v2040_v39 = vsel %vm2036_vm7, %v2011_v5, %v1872_v54  ;;  %v1957_v8 = vsel %vm1949_vm4, %v3735_v28, %v1628_v18 }
 0x27b   : > { %1813 = vrot.lane.b32.xlu0 %v3915_v7, %s3112_s23  ;;  %1649 = vrot.lane.b32.xlu1 %v3879_v26, %s3110_s18 }
 0x27c   : > { %2842 = vmatmul.mubr.msk.f32.gmra.mrb[30].mxu1 %vm2076_vm8, %v2040_v39 }
 0x27d   : > { %v1874_v31 = vpop.permute.xlu0 %1873  ;;  %v1630_v62 = vpop.permute.xlu1 %1629 }
 0x27e   : > { %v2041_v48 = vsel %vm2036_vm7, %v2012_v0, %v1874_v31  ;;  %v1958_v39 = vsel %vm1949_vm4, %v3727_v47, %v1630_v62 }
 0x27f   : > { %1733 = vrot.lane.b32.xlu0 %v3915_v7, %s3111_s19  ;;  %1651 = vrot.lane.b32.xlu1 %v3904_v4, %s3110_s18 }
 0x280   : > { %2844 = vmatprep.mubr.msk.f32.mxu1 %vm2076_vm8, %v2041_v48 }
 0x281   : > { %v1794_v23 = vpop.permute.xlu0 %1793  ;;  %v1792_v24 = vpop.permute.xlu1 %1791 }
 0x282   : > { %v2013_v44 = vsel %vm2007_vm6, %v1984_v17, %v1792_v24  ;;  %v2014_v52 = vsel %vm2007_vm6, %v1985_v33, %v1794_v23 }
 0x283   : > { %1653 = vrot.lane.b32.xlu1 %v3915_v7, %s3110_s18 }
 0x285   : > { %v1714_v63 = vpop.permute.xlu0 %1713  ;;  %v1712_v16 = vpop.permute.xlu1 %1711 }
 0x286   : > { %v1986_v37 = vsel %vm1978_vm5, %v1957_v8, %v1712_v16  ;;  %v1987_v61 = vsel %vm1978_vm5, %v1958_v39, %v1714_v63 }
 0x289   : > { %v1876_v30 = vpop.permute.xlu0 %1875  ;;  %v1632_v13 = vpop.permute.xlu1 %1631 }
 0x28a   : > { %v2042_v21 = vsel %vm2036_vm7, %v2013_v44, %v1876_v30  ;;  %v1959_v59 = vsel %vm1949_vm4, %v3749_v9, %v1632_v13 }
 0x28b   : > { %2845 = vmatmul.mubr.msk.f32.gmra.mrb[32].mxu1 %vm2076_vm8, %v2042_v21 }
 0x28d   : > { %v1878_v32 = vpop.permute.xlu0 %1877  ;;  %v1634_v35 = vpop.permute.xlu1 %1633 }
 0x28e   : > { %v2043_v25 = vsel %vm2036_vm7, %v2014_v52, %v1878_v32  ;;  %v1960_v30 = vsel %vm1949_vm4, %v3755_v15, %v1634_v35 }
 0x28f   : > { %2847 = vmatprep.mubr.msk.f32.mxu1 %vm2076_vm8, %v2043_v25 }
 0x291   : > { %v1798_v57 = vpop.permute.xlu0 %1797  ;;  %v1796_v12 = vpop.permute.xlu1 %1795 }
 0x292   : > { %v2015_v20 = vsel %vm2007_vm6, %v1986_v37, %v1796_v12  ;;  %v2016_v38 = vsel %vm2007_vm6, %v1987_v61, %v1798_v57 }
 0x295   : > { %v1718_v41 = vpop.permute.xlu0 %1717  ;;  %v1716_v34 = vpop.permute.xlu1 %1715 }
 0x296   : > { %v1988_v47 = vsel %vm1978_vm5, %v1959_v59, %v1716_v34  ;;  %v1989_v21 = vsel %vm1978_vm5, %v1960_v30, %v1718_v41 }
 0x299   : > { %v1880_v55 = vpop.permute.xlu0 %1879  ;;  %v1636_v5 = vpop.permute.xlu1 %1635 }
 0x29a   : > { %v2044_v54 = vsel %vm2036_vm7, %v2015_v20, %v1880_v55  ;;  %v1961_v12 = vsel %vm1949_vm4, %v3773_v6, %v1636_v5 }
 0x29b   : > { %2848 = vmatmul.mubr.msk.f32.gmra.mrb[34].mxu1 %vm2076_vm8, %v2044_v54 }
 0x29d   : > { %v1882_v0 = vpop.permute.xlu0 %1881  ;;  %v1638_v31 = vpop.permute.xlu1 %1637 }
 0x29e   : > { %v2045_v18 = vsel %vm2036_vm7, %v2016_v38, %v1882_v0  ;;  %v1962_v37 = vsel %vm1949_vm4, %v3779_v27, %v1638_v31 }
 0x29f   : > { %2850 = vmatprep.mubr.msk.f32.mxu1 %vm2076_vm8, %v2045_v18 }
 0x2a1   : > { %v1802_v48 = vpop.permute.xlu0 %1801  ;;  %v1800_v23 = vpop.permute.xlu1 %1799 }
 0x2a2   : > { %v2017_v62 = vsel %vm2007_vm6, %v1988_v47, %v1800_v23  ;;  %v2018_v14 = vsel %vm2007_vm6, %v1989_v21, %v1802_v48 }
 0x2a5   : > { %v1722_v24 = vpop.permute.xlu0 %1721  ;;  %v1720_v16 = vpop.permute.xlu1 %1719 }
 0x2a6   : > { %v1990_v15 = vsel %vm1978_vm5, %v1961_v12, %v1720_v16  ;;  %v1991_v20 = vsel %vm1978_vm5, %v1962_v37, %v1722_v24 }
 0x2a9   : > { %v1884_v63 = vpop.permute.xlu0 %1883  ;;  %v1640_v17 = vpop.permute.xlu1 %1639 }
 0x2aa   : > { %v2046_v44 = vsel %vm2036_vm7, %v2017_v62, %v1884_v63  ;;  %v1963_v38 = vsel %vm1949_vm4, %v3797_v19, %v1640_v17 }
 0x2ab   : > { %2851 = vmatmul.mubr.msk.f32.gmra.mrb[36].mxu1 %vm2076_vm8, %v2046_v44 }
 0x2ad   : > { %v1886_v33 = vpop.permute.xlu0 %1885  ;;  %v1642_v52 = vpop.permute.xlu1 %1641 }
 0x2ae   : > { %v2047_v9 = vsel %vm2036_vm7, %v2018_v14, %v1886_v33  ;;  %v1964_v23 = vsel %vm1949_vm4, %v3803_v40, %v1642_v52 }
 0x2af   : > { %2853 = vmatprep.mubr.msk.f32.mxu1 %vm2076_vm8, %v2047_v9 }
 0x2b1   : > { %v1806_v13 = vpop.permute.xlu0 %1805  ;;  %v1804_v32 = vpop.permute.xlu1 %1803 }
 0x2b2   : > { %v2019_v35 = vsel %vm2007_vm6, %v1990_v15, %v1804_v32  ;;  %v2020_v55 = vsel %vm2007_vm6, %v1991_v20, %v1806_v13 }
 0x2b5   : > { %v1726_v25 = vpop.permute.xlu0 %1725  ;;  %v1724_v57 = vpop.permute.xlu1 %1723 }
 0x2b6   : > { %v1992_v0 = vsel %vm1978_vm5, %v1963_v38, %v1724_v57  ;;  %v1993_v16 = vsel %vm1978_vm5, %v1964_v23, %v1726_v25 }
 0x2b9   : > { %v1888_v41 = vpop.permute.xlu0 %1887  ;;  %v1644_v34 = vpop.permute.xlu1 %1643 }
 0x2ba   : > { %v2048_v8 = vsel %vm2036_vm7, %v2019_v35, %v1888_v41  ;;  %v1965_v24 = vsel %vm1949_vm4, %v3821_v46, %v1644_v34 }
 0x2bb   : > { %2854 = vmatmul.mubr.msk.f32.gmra.mrb[38].mxu1 %vm2076_vm8, %v2048_v8 }
 0x2bd   : > { %v1890_v54 = vpop.permute.xlu0 %1889  ;;  %v1808_v39 = vpop.permute.xlu1 %1807 }
 0x2be   : > { %v2049_v6 = vsel %vm2036_vm7, %v2020_v55, %v1890_v54  ;;  %v2021_v27 = vsel %vm2007_vm6, %v1992_v0, %v1808_v39  ;;  %v3115_v39 = vmov 0.0|0.0   ;;  %v2364_v0 = vld [vmem:[%s4391_s5 + $0x10] sm:$0xff] }
 0x2bf   : > { %2856 = vmatprep.mubr.msk.f32.mxu1 %vm2076_vm8, %v2049_v6  ;;  %2907 = vmatprep.subr.bf16.mxu1 %v3115_v39 }
 0x2c1   : > { %v1810_v5 = vpop.permute.xlu0 %1809  ;;  %v1728_v61 = vpop.permute.xlu1 %1727 }
 0x2c2   : > { %v1994_v19 = vsel %vm1978_vm5, %v1965_v24, %v1728_v61  ;;  %v2022_v59 = vsel %vm2007_vm6, %v1993_v16, %v1810_v5 }
 0x2c5   : > { %v1892_v31 = vpop.permute.xlu0 %1891  ;;  %v1812_v18 = vpop.permute.xlu1 %1811 }
 0x2c6   : > { %v2050_v48 = vsel %vm2036_vm7, %v2021_v27, %v1892_v31  ;;  %v2023_v47 = vsel %vm2007_vm6, %v1994_v19, %v1812_v18 }
 0x2c7   : > { %2857 = vmatmul.mubr.msk.f32.gmra.mrb[40].mxu1 %vm2076_vm8, %v2050_v48 }
 0x2c9   : > { %v1894_v62 = vpop.permute.xlu0 %1893  ;;  %v1896_v63 = vpop.permute.xlu1 %1895 }
 0x2ca   : > { %v2051_v17 = vsel %vm2036_vm7, %v2022_v59, %v1894_v62  ;;  %v2052_v44 = vsel %vm2036_vm7, %v2023_v47, %v1896_v63  ;;  %v2367_v59 = vld [vmem:[%s4391_s5 + $0x28] sm:$0xff] }
 0x2cb   : > { %2859 = vmatprep.mubr.msk.f32.mxu1 %vm2076_vm8, %v2051_v17 }
 0x2cc   : > { %2860 = vmatmul.mubr.msk.f32.gmra.mrb[42].mxu1 %vm2076_vm8, %v2052_v44  ;;  %v2368_v44 = vld [vmem:[%s4391_s5 + $0x30] sm:$0x3] }
 0x2cd   : > { %v1097_v40 = vpop.permute.xlu0 %1096  ;;  %v1099_v46 = vpop.permute.xlu1 %1098 }
 0x2ce   : > { %v1155_v6 = vadd.f32 %v1097_v40, %v3521_v49  ;;  %v2365_v49 = vld [vmem:[%s4391_s5 + $0x18] sm:$0xff]  ;;  %v1156_v27 = vadd.f32 %v1099_v46, %v3528_v29  ;;  %v3116_v40 = vmov 0.0  }
 0x2cf   : > { %v2911_v31 = vpack.c.bf16 %v2365_v49, %v2364_v0 }
 0x2d1   : > { %v1209_v30 = vpop.permute.xlu0 %1208  ;;  %v1211_v21 = vpop.permute.xlu1 %1210 }
 0x2d2   : > { %v1267_v5 = vadd.f32 %v1209_v30, %v1155_v6  ;;  %v1268_v18 = vadd.f32 %v1211_v21, %v1156_v27 }
 0x2d5   : > { %v1101_v14 = vpop.permute.xlu0 %1100  ;;  %v1321_v33 = vpop.permute.xlu1 %1320 }
 0x2d6   : > { %v1157_v25 = vadd.f32 %v1101_v14, %v3535_v11  ;;  %v1379_v61 = vadd.f32 %v1321_v33, %v1267_v5 }
 0x2d9   : > { %v1323_v52 = vpop.permute.xlu0 %1322  ;;  %v1213_v9 = vpop.permute.xlu1 %1212 }
 0x2da   : > { %v1269_v57 = vadd.f32 %v1213_v9, %v1157_v25  ;;  %v1380_v23 = vadd.f32 %v1323_v52, %v1268_v18 }
 0x2dd   : > { %v1433_v13 = vpop.permute.xlu0 %1432  ;;  %v1435_v32 = vpop.permute.xlu1 %1434 }
 0x2de   : > { %v1491_v38 = vadd.f32 %v1433_v13, %v1379_v61 }
 0x2e1   : > { %v1325_v12 = vpop.permute.xlu0 %1324  ;;  %v1437_v15 = vpop.permute.xlu1 %1436 }
 0x2e2   : > { %v1381_v35 = vadd.f32 %v1325_v12, %v1269_v57 }
 0x2e4   : > { %v1493_v41 = vadd.f32 %v1437_v15, %v1381_v35 }
 0x2e5   : > { %v1648_v34 = vpop.permute.xlu1 %1647  ;;  %v1646_v30 = vpop.permute.xlu0 %1645 }
 0x2e6   : > { %v4068_v8 = vadd.f32 %v3652_v45, %v1493_v41  ;;  %v1967_v20 = vsel %vm1949_vm4, %v3845_v22, %v1648_v34  ;;  %v2362_v45 = vld [vmem:[%s4391_s5] sm:$0xff]  ;;  %v2363_v22 = vld [vmem:[%s4391_s5 + $0x8] sm:$0xff] }
 0x2e8   : > { %v1556_v37 = vmax.f32 %v4068_v8, %v3908_v3  ;;  %v2908_v3 = vpack.c.bf16 %v2363_v22, %v2362_v45 }
 0x2e9   : > { %v1732_v55 = vpop.permute.xlu1 %1731  ;;  %v1730_v21 = vpop.permute.xlu0 %1729 }
 0x2ea   : > { %v4074_v54 = vmax.f32 %v1556_v37, 0.0  ;;  %v4077_v11 = vsel %vm1978_vm5, %v1967_v20, %v1732_v55  ;;  %2909 = vmatpush3.bf16.msra.mxu1 %v2908_v3 }
 0x2eb   : > { %2910 = vmatprep.subr.bf16.mxu1 %v3115_v39 }
 0x2ec   : > { %1823 = vrot.lane.b32.xlu1 %v4074_v54, %s3112_s23  ;;  %1903 = vrot.lane.b32.xlu0 %v4074_v54, %s3114_s20 }
 0x2ed   : > { %v4192_v14 = vpop.permute.xlu1 %1649  ;;  %v1814_v9 = vpop.permute.xlu0 %1813 }
 0x2ee   : > { %2912 = vmatpush3.bf16.msra.mxu1 %v2911_v31 }
 0x2ef   : > { %2913 = vmatprep.subr.bf16.mxu1 %v3115_v39 }
 0x2f0   : > { %1743 = vrot.lane.b32.xlu1 %v4074_v54, %s3111_s19  ;;  %1905 = vrot.lane.b32.xlu0 %v3923_v56, %s3114_s20 }
 0x2f1   : > { %v1734_v13 = vpop.permute.xlu0 %1733 }
 0x2f4   : > { %1827 = vrot.lane.b32.xlu1 %v3944_v1, %s3112_s23  ;;  %1907 = vrot.lane.b32.xlu0 %v3944_v1, %s3114_s20 }
 0x2f8   : > { %1663 = vrot.lane.b32.xlu1 %v4074_v54, %s3110_s18  ;;  %1825 = vrot.lane.b32.xlu0 %v3923_v56, %s3112_s23 }
 0x2fc   : > { %1747 = vrot.lane.b32.xlu1 %v3944_v1, %s3111_s19  ;;  %1909 = vrot.lane.b32.xlu0 %v3677_v42, %s3114_s20 }
 0x300   : > { %1831 = vrot.lane.b32.xlu1 %v3679_v10, %s3112_s23  ;;  %1911 = vrot.lane.b32.xlu0 %v3679_v10, %s3114_s20 }
 0x304   : > { %1665 = vrot.lane.b32.xlu1 %v3923_v56, %s3110_s18  ;;  %1745 = vrot.lane.b32.xlu0 %v3923_v56, %s3111_s19  ;;  %v3041_v56 = vld [vmem:[%s4388_s2] ss:$0 sm:$0xff] }
 0x305   : > { %v1526_v48 = vadd.f32 %v3041_v56, %v1491_v38 }
 0x307   : > { %v1553_v29 = vmax.f32 %v3896_v36, %v1526_v48  ;;  %v2366_v36 = vld [vmem:[%s4391_s5 + $0x20] sm:$0xff] }
 0x308   : > { %1667 = vrot.lane.b32.xlu1 %v3944_v1, %s3110_s18  ;;  %1829 = vrot.lane.b32.xlu0 %v3677_v42, %s3112_s23  ;;  %v1492_v1 = vadd.f32 %v1435_v32, %v1380_v23  ;;  %v2914_v47 = vpack.c.bf16 %v2367_v59, %v2366_v36  ;;  %v1966_v59 = vsel %vm1949_vm4, %v3827_v51, %v1646_v30 }
 0x309   : > { %v4137_v24 = vmax.f32 %v1553_v29, 0.0 }
 0x30a   : > { %v1527_v16 = vadd.f32 %v3041_v56, %v1492_v1  ;;  %2915 = vmatpush3.bf16.msra.mxu1 %v2914_v47  ;;  %v1995_v47 = vsel %vm1978_vm5, %v1966_v59, %v1730_v21 }
 0x30b   : > { %2892 = vmatprep.subr.mxu1 %v3116_v40 }
 0x30c   : > { %1815 = vrot.lane.b32.xlu1 %v3917_v50, %s3112_s23  ;;  %1913 = vrot.lane.b32.xlu0 %v3693_v43, %s3114_s20  ;;  %v1554_v19 = vmax.f32 %v1526_v48, %v1527_v16  ;;  %v1555_v63 = vmax.f32 %v1527_v16, %v4068_v8 }
 0x30e   : > { %v4153_v62 = vmax.f32 %v1554_v19, 0.0  ;;  %v4164_v17 = vmax.f32 %v1555_v63, 0.0  ;;  %2893 = vmatpush3.msk.msra.mxu1 %vm2380_vm9, %v2368_v44  ;;  %v2024_v63 = vsel %vm2007_vm6, %v1995_v47, %v1814_v9 }
 0x310   : > { %1735 = vrot.lane.b32.xlu1 %v3917_v50, %s3111_s19  ;;  %1915 = vrot.lane.b32.xlu0 %v3699_v53, %s3114_s20 }
 0x314   : > { %1655 = vrot.lane.b32.xlu1 %v3917_v50, %s3110_s18  ;;  %1897 = vrot.lane.b32.xlu0 %v4137_v24, %s3114_s20 }
 0x318   : > { %1657 = vrot.lane.b32.xlu1 %v4137_v24, %s3110_s18  ;;  %1817 = vrot.lane.b32.xlu0 %v4137_v24, %s3112_s23 }
 0x31c   : > { %1819 = vrot.lane.b32.xlu1 %v4153_v62, %s3112_s23  ;;  %1737 = vrot.lane.b32.xlu0 %v4137_v24, %s3111_s19 }
 0x320   : > { %1739 = vrot.lane.b32.xlu1 %v4153_v62, %s3111_s19  ;;  %1899 = vrot.lane.b32.xlu0 %v4153_v62, %s3114_s20 }
 0x324   : > { %1659 = vrot.lane.b32.xlu1 %v4153_v62, %s3110_s18  ;;  %1901 = vrot.lane.b32.xlu0 %v4164_v17, %s3114_s20 }
 0x328   : > { %1751 = vrot.lane.b32.xlu1 %v3679_v10, %s3111_s19  ;;  %1821 = vrot.lane.b32.xlu0 %v4164_v17, %s3112_s23 }
 0x32c   : > { %1661 = vrot.lane.b32.xlu1 %v4164_v17, %s3110_s18  ;;  %1741 = vrot.lane.b32.xlu0 %v4164_v17, %s3111_s19  ;;  %s3046_s18 = sshll.u32 %s3118_s28, 4  ;;  %s3047_s18 = int_to_ptr.vmem [resolvable:$false] %s3046_s18 }
 0x32d   : > { %s3048_s29 = scalar_lea.vmem %s3047_s18, 256 }
 0x330   : > { %1835 = vrot.lane.b32.xlu1 %v3699_v53, %s3112_s23  ;;  %1749 = vrot.lane.b32.xlu0 %v3677_v42, %s3111_s19  ;;  %v4197_v53 = vld [vmem:[%s4390_s4] ss:$0 sm:$0xff]  ;;  %s272_s19 = sand.u32 1, %s3096_s25  }
 0x331   : > { %s2456_s21 = scalar_lea.sflag [#allocation3], %s272_s19 }
 0x334   : > { %1919 = vrot.lane.b32.xlu1 %v3735_v28, %s3114_s20  ;;  %1833 = vrot.lane.b32.xlu0 %v3693_v43, %s3112_s23  ;;  %s2532_s23 = sshll.u32 %s272_s19, 3 }
 0x335   : > { %s274_s17 = scalar_lea.vmem [#allocation2], %s2532_s23 }
 0x336   : > { %s2469_s8 = sshll.u32 %s274_s17, 4  ;;  %s4346_s8 = int_to_ptr.vmem [resolvable:$true] %s2469_s8 }
 0x337   : > { %s3042_s22 = scalar_lea.vmem %s4346_s8, 128  ;;  %p3049_p0 = scmp.lt.s32.totalorder %s4346_s8, %s3047_s18 }
 0x338   : > { %1917 = vrot.lane.b32.xlu0 %v3701_v58, %s3114_s20  ;;  %v1652_v58 = vpop.permute.xlu1 %1651  ;;  %p3043_p11 = scmp.ne.s32.totalorder %s4346_s8, %s3042_s22  ;;  %p3050_p1 = scmp.lt.s32.totalorder %s3048_s29, %s3042_s22 }
 0x33a   : > { %p3044_p12 = pnand %p3043_p11, %p3197_p5  ;;  %p3051_p2 = por %p3050_p1, %p3049_p0 }
 0x33c   : > { %v4201_v32 = vpop.permute.xlu1 %1653  ;;  %p3045_p13 = pneg %p3044_p12 }
 0x33e   : > { %p3052_p3 = pnand %p3051_p2, %p3045_p13 }
 0x33f   : > { %v2840_v10 = vpop.f32.mrb[28].mxu1 }
 0x340   : > { %v2231_v46 = vpop.f32.mrb[29].mxu1 }
 0x341   : > { %v2232_v28 = vadd.f32 %v4197_v53, %v2231_v46 }
 0x34f   : > { %v2843_v42 = vpop.f32.mrb[30].mxu1 }
 0x350   : > { %v2240_v33 = vpop.f32.mrb[31].mxu1 }
 0x351   : > { %v2241_v43 = vadd.f32 %v4197_v53, %v2240_v33 }
 0x353   : > { %v2350_v52 = vmax.f32 %v2232_v28, %v2241_v43 }
 0x355   : > { %v2354_v0 = vmax.f32 %v2350_v52, 0.0 }
 0x35e   : > { %v4203_v25 = vpop.permute.xlu1 %1823  ;;  %v4205_v57 = vpop.permute.xlu0 %1903 }
 0x35f   : > { %v2846_v12 = vpop.f32.mrb[32].mxu1 }
 0x360   : > { %v2249_v15 = vpop.f32.mrb[33].mxu1 }
 0x361   : > { %v2250_v39 = vadd.f32 %v4197_v53, %v2249_v15 }
 0x362   : > { %v4207_v35 = vpop.permute.xlu1 %1743  ;;  %v4209_v41 = vpop.permute.xlu0 %1905 }
 0x366   : > { %v4211_v34 = vpop.permute.xlu1 %1827  ;;  %v4213_v8 = vpop.permute.xlu0 %1907 }
 0x36a   : > { %v4215_v37 = vpop.permute.xlu1 %1663  ;;  %v4217_v20 = vpop.permute.xlu0 %1825 }
 0x36e   : > { %v4219_v55 = vpop.permute.xlu1 %1747  ;;  %v4221_v45 = vpop.permute.xlu0 %1909 }
 0x36f   : > { %v2849_v22 = vpop.f32.mrb[34].mxu1 }
 0x370   : > { %v2258_v3 = vpop.f32.mrb[35].mxu1  ;;  %v1969_v22 = vsel %vm1949_vm4, %v3870_v2, %v1652_v58 }
 0x371   : > { %v2259_v6 = vadd.f32 %v4197_v53, %v2258_v3 }
 0x372   : > { %v4225_v5 = vpop.permute.xlu1 %1831  ;;  %v4227_v61 = vpop.permute.xlu0 %1911 }
 0x373   : > { %v2351_v38 = vmax.f32 %v2250_v39, %v2259_v6  ;;  %v1968_v6 = vsel %vm1949_vm4, %v3851_v60, %v4192_v14 }
 0x375   : > { %v2355_v49 = vmax.f32 %v2351_v38, 0.0 }
 0x376   : > { %v4229_v27 = vpop.permute.xlu1 %1665  ;;  %v4231_v31 = vpop.permute.xlu0 %1745 }
 0x377   : > { %v2358_v18 = vadd.f32 %v2355_v49, %v2354_v0  ;;  %v1997_v0 = vsel %vm1978_vm5, %v1968_v6, %v1734_v13  ;;  %v1970_v13 = vsel %vm1949_vm4, %v3879_v26, %v4201_v32 }
 0x37a   : > { %v4233_v56 = vpop.permute.xlu1 %1667  ;;  %v4235_v48 = vpop.permute.xlu0 %1829 }
 0x37e   : > { %v1816_v23 = vpop.permute.xlu1 %1815  ;;  %v4237_v29 = vpop.permute.xlu0 %1913 }
 0x37f   : > { %v2852_v1 = vpop.f32.mrb[36].mxu1  ;;  %v2025_v30 = vsel %vm2007_vm6, %v4077_v11, %v1816_v23 }
 0x380   : > { %v2267_v16 = vpop.f32.mrb[37].mxu1 }
 0x381   : > { %v2268_v15 = vadd.f32 %v4197_v53, %v2267_v16 }
 0x382   : > { %v1736_v19 = vpop.permute.xlu1 %1735  ;;  %v4239_v36 = vpop.permute.xlu0 %1915 }
 0x383   : > { %v1998_v38 = vsel %vm1978_vm5, %v1969_v22, %v1736_v19 }
 0x386   : > { %v1656_v44 = vpop.permute.xlu1 %1655  ;;  %v1898_v10 = vpop.permute.xlu0 %1897 }
 0x387   : > { %v2053_v46 = vsel %vm2036_vm7, %v2024_v63, %v1898_v10  ;;  %v1971_v23 = vsel %vm1949_vm4, %v3904_v4, %v1656_v44 }
 0x388   : > { %2862 = vmatprep.mubr.msk.f32.mxu1 %vm2076_vm8, %v2053_v46 }
 0x38a   : > { %v1658_v42 = vpop.permute.xlu1 %1657  ;;  %v1818_v33 = vpop.permute.xlu0 %1817 }
 0x38b   : > { %v2026_v2 = vsel %vm2007_vm6, %v1997_v0, %v1818_v33  ;;  %v1972_v32 = vsel %vm1949_vm4, %v3915_v7, %v1658_v42 }
 0x38e   : > { %v1820_v28 = vpop.permute.xlu1 %1819  ;;  %v1738_v43 = vpop.permute.xlu0 %1737 }
 0x38f   : > { %v2855_v52 = vpop.f32.mrb[38].mxu1  ;;  %v2027_v11 = vsel %vm2007_vm6, %v1998_v38, %v1820_v28 }
 0x390   : > { %v2276_v12 = vpop.f32.mrb[39].mxu1  ;;  %v2056_v14 = vsel %vm2036_vm7, %v2027_v11, %v4205_v57 }
 0x391   : > { %v2277_v51 = vadd.f32 %v4197_v53, %v2276_v12 }
 0x392   : > { %v1740_v21 = vpop.permute.xlu1 %1739  ;;  %v1900_v9 = vpop.permute.xlu0 %1899 }
 0x393   : > { %v2352_v3 = vmax.f32 %v2268_v15, %v2277_v51  ;;  %v2054_v39 = vsel %vm2036_vm7, %v2025_v30, %v1900_v9  ;;  %v2000_v59 = vsel %vm1978_vm5, %v1971_v23, %v1740_v21 }
 0x394   : > { %2863 = vmatmul.mubr.msk.f32.gmra.mrb[44].mxu1 %vm2076_vm8, %v2054_v39  ;;  %v2029_v19 = vsel %vm2007_vm6, %v2000_v59, %v4203_v25 }
 0x395   : > { %v2356_v49 = vmax.f32 %v2352_v3, 0.0 }
 0x396   : > { %v1660_v58 = vpop.permute.xlu1 %1659  ;;  %v1902_v1 = vpop.permute.xlu0 %1901 }
 0x397   : > { %v2359_v16 = vadd.f32 %v2358_v18, %v2356_v49  ;;  %v2055_v60 = vsel %vm2036_vm7, %v2026_v2, %v1902_v1  ;;  %v1973_v4 = vsel %vm1949_vm4, %v3917_v50, %v1660_v58  ;;  %v1999_v18 = vsel %vm1978_vm5, %v1970_v13, %v1738_v43 }
 0x398   : > { %2865 = vmatprep.mubr.msk.f32.mxu1 %vm2076_vm8, %v2055_v60  ;;  %v2002_v57 = vsel %vm1978_vm5, %v1973_v4, %v4207_v35  ;;  %v2058_v50 = vsel %vm2036_vm7, %v2029_v19, %v4213_v8 }
 0x399   : > { %2866 = vmatmul.mubr.msk.f32.gmra.mrb[46].mxu1 %vm2076_vm8, %v2056_v14 }
 0x39a   : > { %v1752_v47 = vpop.permute.xlu1 %1751  ;;  %v1822_v63 = vpop.permute.xlu0 %1821 }
 0x39b   : > { %v2028_v44 = vsel %vm2007_vm6, %v1999_v18, %v1822_v63  ;;  %v2858_v10 = vpop.f32.mrb[40].mxu1 }
 0x39c   : > { %v2285_v46 = vpop.f32.mrb[41].mxu1  ;;  %v2057_v26 = vsel %vm2036_vm7, %v2028_v44, %v4209_v41  ;;  %v2031_v41 = vsel %vm2007_vm6, %v2002_v57, %v4211_v34 }
 0x39d   : > { %2868 = vmatprep.mubr.msk.f32.mxu1 %vm2076_vm8, %v2057_v26  ;;  %v2286_v42 = vadd.f32 %v4197_v53, %v2285_v46  ;;  %v2060_v34 = vsel %vm2036_vm7, %v2031_v41, %v4227_v61 }
 0x39e   : > { %v1662_v25 = vpop.permute.xlu1 %1661  ;;  %v1742_v33 = vpop.permute.xlu0 %1741  ;;  %2869 = vmatmul.mubr.msk.f32.gmra.mrb[48].mxu1 %vm2076_vm8, %v2058_v50 }
 0x39f   : > { %v1974_v28 = vsel %vm1949_vm4, %v4137_v24, %v1662_v25  ;;  %v2001_v35 = vsel %vm1978_vm5, %v1972_v32, %v1742_v33  ;;  %v2861_v43 = vpop.f32.mrb[42].mxu1 }
 0x3a0   : > { %v2003_v52 = vsel %vm1978_vm5, %v1974_v28, %v4231_v31  ;;  %v2030_v8 = vsel %vm2007_vm6, %v2001_v35, %v4217_v20  ;;  %v2294_v7 = vpop.f32.mrb[43].mxu1  ;;  %v1975_v31 = vsel %vm1949_vm4, %v4153_v62, %v4215_v37  ;;  %v1976_v62 = vsel %vm1949_vm4, %v4164_v17, %v4229_v27 }
 0x3a1   : > { %v2295_v12 = vadd.f32 %v4197_v53, %v2294_v7  ;;  %v2059_v24 = vsel %vm2036_vm7, %v2030_v8, %v4221_v45  ;;  %v2032_v15 = vsel %vm2007_vm6, %v2003_v52, %v4235_v48  ;;  %v2004_v45 = vsel %vm1978_vm5, %v1975_v31, %v4219_v55 }
 0x3a2   : > { %v1750_v51 = vpop.permute.xlu0 %1749  ;;  %2871 = vmatprep.mubr.msk.f32.mxu1 %vm2076_vm8, %v2059_v24  ;;  %v2061_v20 = vsel %vm2036_vm7, %v2032_v15, %v4237_v29  ;;  %v1836_v30 = vpop.permute.xlu1 %1835  ;;  %v2033_v48 = vsel %vm2007_vm6, %v2004_v45, %v4225_v5  ;;  %v1977_v37 = vsel %vm1949_vm4, %v4074_v54, %v4233_v56 }
 0x3a3   : > { %v2353_v53 = vmax.f32 %v2286_v42, %v2295_v12  ;;  %2872 = vmatmul.mubr.msk.f32.gmra.mrb[50].mxu1 %vm2076_vm8, %v2060_v34  ;;  %v2062_v29 = vsel %vm2036_vm7, %v2033_v48, %v4239_v36  ;;  %v2005_v55 = vsel %vm1978_vm5, %v1976_v62, %v1750_v51  ;;  %v2006_v5 = vsel %vm1978_vm5, %v1977_v37, %v1752_v47 }
 0x3a4   : > { %2874 = vmatprep.mubr.msk.f32.mxu1 %vm2076_vm8, %v2061_v20  ;;  %v2035_v39 = vsel %vm2007_vm6, %v2006_v5, %v1836_v30 }
 0x3a5   : > { %v2357_v61 = vmax.f32 %v2353_v53, 0.0 }
 0x3a6   : > { %v1834_v21 = vpop.permute.xlu0 %1833  ;;  %v1920_v22 = vpop.permute.xlu1 %1919 }
 0x3a7   : > { %v2360_v9 = vadd.f32 %v2359_v16, %v2357_v61  ;;  %2875 = vmatmul.mubr.msk.f32.gmra.mrb[52].mxu1 %vm2076_vm8, %v2062_v29  ;;  %v2034_v3 = vsel %vm2007_vm6, %v2005_v55, %v1834_v21  ;;  %v2064_v38 = vsel %vm2036_vm7, %v2035_v39, %v1920_v22 }
 0x3a9   : > { %v2361_v54 = vmul.f32 0.25, %v2360_v9 }
 0x3aa   : > { %v1918_v36 = vpop.permute.xlu0 %1917 }
 0x3ab   : > { %v2063_v6 = vsel %vm2036_vm7, %v2034_v3, %v1918_v36 }
 0x3ac   : > { %2877 = vmatprep.mubr.msk.f32.mxu1 %vm2076_vm8, %v2063_v6 }
 0x3ad   : > { %2878 = vmatmul.mubr.msk.f32.gmra.mrb[54].mxu1 %vm2076_vm8, %v2064_v38 }
 0x3ae   : > { %2894 = vmatprep.mubr.msk.f32.mxu1 %vm3117_vm10, %v3116_v40  ;;  %v2638_v40 = vld [vmem:[%s4392_s6] ss:$0 sm:$0xff] }
 0x3b1   : > { %2895 = vmatmul.mubr.msk.f32.vlgmr.msra.gmra.mrb[56].mxu1 %vm2376_vm11, %v2361_v54 }
 0x467   : > { %v2864_v17 = vpop.f32.mrb[44].mxu1 }
 0x468   : > { %v2303_v27 = vpop.f32.mrb[45].mxu1 }
 0x46c   : > { %v2867_v56 = vpop.f32.mrb[46].mxu1 }
 0x46d   : > { %v2311_v0 = vpop.f32.mrb[47].mxu1 }
 0x471   : > { %v2870_v11 = vpop.f32.mrb[48].mxu1 }
 0x472   : > { %v2319_v49 = vpop.f32.mrb[49].mxu1 }
 0x476   : > { %v2873_v23 = vpop.f32.mrb[50].mxu1 }
 0x477   : > { %v2327_v2 = vpop.f32.mrb[51].mxu1 }
 0x47a   : > { %v2876_v58 = vpop.f32.mrb[52].mxu1 }
 0x47b   : > { %v2335_v1 = vpop.f32.mrb[53].mxu1 }
 0x480   : > { %v2879_v16 = vpop.f32.mrb[54].mxu1 }
 0x481   : > { %v2343_v59 = vpop.f32.mrb[55].mxu1 }
 0x484   : > { %v2450_v60 = vpop.f32.mrb[56].mxu1 }
 0x485   : > { %v2451_v14 = vadd.f32 %v2638_v40, %v2450_v60  ;;  %v2896_v13 = vpop.f32.mrb[57].mxu1 }
 0x487   : > { %2454 = vst [vmem:[%s274_s17] sm:$0xff] %v2451_v14 }
 0x488   : > { %3055 = shalt.err (!%p3052_p3)
}
 0x489   : > { %s3056_s19 = scalar_lea.hbm %s4344_s13, 128  ;;  %s3060_s14 = scalar_lea.hbm %s4393_s7, 256 }
 0x48a   : > { %p3057_p4 = scmp.ne.s32.totalorder %s4344_s13, %s3056_s19  ;;  %p3061_p9 = scmp.lt.u32.totalorder %s4344_s13, %s4393_s7 }
 0x48b   : > { %p3062_p10 = scmp.lt.u32.totalorder %s3060_s14, %s3056_s19  ;;  %p3064_p12 = scmp.lt.u32.totalorder %s3056_s19, %s4344_s13 }
 0x48c   : > { %p3058_p7 = pnand %p3057_p4, %p3197_p5 }
 0x48d   : > { %p3063_p11 = por %p3062_p10, %p3061_p9 }
 0x48e   : > { %p3059_p8 = pneg %p3058_p7 }
 0x48f   : > { %p3065_p13 = por %p3064_p12, %p3063_p11 }
 0x491   : > { %p3066_p0 = pnand %p3065_p13, %p3059_p8 }
 0x493   : > { %3069 = shalt.err (!%p3066_p0)
}
 0x494   : > { %2917 = dma.vmem_to_hbm [thread:$0]  (%p3197_p5), %s4346_s8, 128, %s4344_s13, %s2456_s21  }
 0x495 PF: > { %p2923_p1 = scmp.ge.s32.totalorder %s3104_s27, 2  ;;  %s2481_s9 = sand.u32 1, %s3092_s24  }
 0x496   : > { %s2482_s15 = scalar_lea.sflag [#allocation3], %s2481_s9 }
 0x497   : > { %p2920_p2 = pnand %p2923_p1, %p3201_p6 }
 0x499   : > { %3087 = dma.done.wait (!%p2920_p2), %s2482_s15, 128  }
 0x49a   : > { %3089 = vsyncadd (!%p2920_p2), %s2482_s15, 4294967168  ;;  %p17_p3 = scmp.ge.s32.totalorder %s3184_s30, 4   ;;  %s4419_s24 = smov %s3096_s25 }
 0x49b   : > { %s4420_s25 = smov %s3100_s26  ;;  %s4421_s26 = smov %s3195_s10 }
 0x49c   : > { %s4422_s27 = smov %s3184_s30  ;;  %19 = sbr.rel (!%p17_p3) target bundleno = 3 (0x3), region = 83 }
 0x4a3   :  { %2487 = vsyncpa [#allocation3], 1 }
 0x4a4   :  { %2489 = vsyncpa [#allocation3 + $0x1], 1 }

</bundles_post_ra>
